<compile_context>
chip_gen: v5e
topology: v5e:2x2
jax: 0.10.0
libtpu: 0.0.40
codegen_flags: <defaults>
</compile_context>

<pallas_src>
import functools

import numpy as np
import jax
import jax.numpy as jnp
from jax import lax
from jax.experimental import pallas as pl
from jax.experimental.pallas import tpu as pltpu

NUM_CONV = 2
CONV_DIM = 8
NUM_FC = 2
FC_DIM = 32
EMB_DIM = 16
LANE = 128          # lane-padded width for the fc tail and the output


# ---------------------------------------------------------------------------
# Fused kernel: conv1 -> conv2 -> (folded flatten) -> fc1 -> fc2 -> emb -> l2
# Activation layout inside the kernel: rows = (h, box), lanes = w*C + c.
# ---------------------------------------------------------------------------
def _fused_head_kernel(x_ref, t1_ref, b1_ref, t2_ref, b2_ref,
                       w1h_ref, f1b_ref, f2w_ref, f2b_ref, ew_ref, eb_ref,
                       o_ref, pad1_ref, pad2_ref, *, BB, H, W, Cin, Cd):
    f32 = jnp.float32
    K1 = W * Cin                      # conv1 contraction width (64)
    N = W * Cd                        # conv output lane width (128)

    # Only the two H-halo rows need to be zero (W-pad is folded into weights).
    # Zero them unconditionally every step: ~2 row-slabs, megacore-safe.
    zero1 = jnp.zeros((BB, K1), f32)
    pad1_ref[0, :, :] = zero1
    pad1_ref[H + 1, :, :] = zero1
    zero2 = jnp.zeros((BB, N), f32)
    pad2_ref[0, :, :] = zero2
    pad2_ref[H + 1, :, :] = zero2

    # interior rows = raw input; lane offset 0, full width -> unmasked stores
    pad1_ref[1:H + 1, :, :] = x_ref[...]

    # ---- conv1 + bias + ReLU : 3 lane-dense row-Toeplitz matmuls
    acc = jnp.dot(pad1_ref[0:H, :, :].reshape(H * BB, K1), t1_ref[0],
                  preferred_element_type=f32)
    for kh in range(1, 3):
        acc = acc + jnp.dot(pad1_ref[kh:kh + H, :, :].reshape(H * BB, K1),
                            t1_ref[kh], preferred_element_type=f32)
    act1 = jnp.maximum(acc + b1_ref[...], 0.0)                 # (H*BB, 128)

    # ---- conv2 + bias + ReLU  (K = N = 128: exact 128x128 MXU tile on v5e)
    pad2_ref[1:H + 1, :, :] = act1.reshape(H, BB, N)
    acc = jnp.dot(pad2_ref[0:H, :, :].reshape(H * BB, N), t2_ref[0],
                  preferred_element_type=f32)
    for kh in range(1, 3):
        acc = acc + jnp.dot(pad2_ref[kh:kh + H, :, :].reshape(H * BB, N),
                            t2_ref[kh], preferred_element_type=f32)
    act2 = jnp.maximum(acc + b2_ref[...], 0.0)                 # (H*BB, 128)

    # ---- fc1 + ReLU: torch.flatten(NCHW) permutation folded into w1h
    # (H, 128, 128); contract per row-band h -> no in-kernel mega-relayout.
    h1 = jnp.dot(act2[0:BB, :], w1h_ref[0], preferred_element_type=f32)
    for h in range(1, H):
        h1 = h1 + jnp.dot(act2[h * BB:(h + 1) * BB, :], w1h_ref[h],
                          preferred_element_type=f32)
    h1 = jnp.maximum(h1 + f1b_ref[...], 0.0)                   # (BB, 128)

    # ---- fc2 + ReLU, embedding_pred, F.normalize(p=2, dim=1)
    # All weights/biases are lane-padded to 128; padded lanes stay exactly 0,
    # so the norm below is unaffected.
    h2 = jnp.maximum(
        jnp.dot(h1, f2w_ref[...], preferred_element_type=f32) + f2b_ref[...],
        0.0)
    e = jnp.dot(h2, ew_ref[...], preferred_element_type=f32) + eb_ref[...]
    ss = jnp.sum(e * e, axis=1, keepdims=True)
    # x / max(||x||, 1e-12)  ==  x * rsqrt(max(||x||^2, 1e-24))   (EUP rsqrt)
    e = e * lax.rsqrt(jnp.maximum(ss, 1e-24))
    o_ref[...] = e.astype(o_ref.dtype)                         # (BB, 128)


# ---------------------------------------------------------------------------
# One-time host-side weight re-layout (zero runtime cost).
# ---------------------------------------------------------------------------
def _conv_toeplitz(w_hwio, W):
    """(3,3,Cin,Cout) conv weight -> (3, W*Cin, W*Cout) row-Toeplitz blocks
    with the W zero-padding folded in (out-of-range kw taps dropped):

        T[kh, wi*Cin + ci, w*Cout + co] = w_hwio[kh, kw, ci, co]
        where wi = w + kw - 1 and only 0 <= wi < W entries are written.
    """
    _, _, cin, cout = w_hwio.shape
    t = np.zeros((3, W * cin, W * cout), np.float32)
    for kh in range(3):
        for kw in range(3):
            for w in range(W):
                wi = w + kw - 1
                if 0 <= wi < W:
                    t[kh, wi * cin:(wi + 1) * cin,
                      w * cout:(w + 1) * cout] = w_hwio[kh, kw]
    return t


def _pad_lanes(a, lanes=LANE):
    a = np.asarray(a, np.float32)
    pad = lanes - a.shape[-1]
    if pad <= 0:
        return a
    widths = [(0, 0)] * (a.ndim - 1) + [(0, pad)]
    return np.pad(a, widths)


def prepare_kernel_params(params, H, W):
    (c1w, c1b), (c2w, c2b) = params["convs"]
    (f1w, f1b), (f2w, f2b) = params["fcs"]
    ew, eb = params["emb"]
    cd = c1w.shape[-1]
    fdim = f1w.shape[-1]
    # fold torch.flatten-of-NCHW (row order (c, h, w)) into fc1 rows ordered
    # to match the kernel's lane layout (h, w*Cd + c).
    w1h = (np.asarray(f1w).reshape(cd, H, W, fdim)
           .transpose(1, 2, 0, 3).reshape(H, W * cd, fdim))
    # lane-pad the fc tail (K and N) to 128; padded rows hit zero lanes only.
    f2w_p = np.zeros((LANE, LANE), np.float32)
    f2w_p[:fdim, :np.asarray(f2w).shape[-1]] = np.asarray(f2w)
    ew_np = np.asarray(ew)
    ew_p = np.zeros((LANE, LANE), np.float32)
    ew_p[:ew_np.shape[0], :ew_np.shape[1]] = ew_np
    return {
        "t1": jnp.asarray(_conv_toeplitz(np.asarray(c1w), W)),
        "b1": jnp.asarray(np.tile(np.asarray(c1b), W)[None, :]),
        "t2": jnp.asarray(_conv_toeplitz(np.asarray(c2w), W)),
        "b2": jnp.asarray(np.tile(np.asarray(c2b), W)[None, :]),
        "w1h": jnp.asarray(_pad_lanes(w1h)),                   # (H, W*Cd, 128)
        "f1b": jnp.asarray(_pad_lanes(np.asarray(f1b)[None, :])),
        "f2w": jnp.asarray(f2w_p),                             # (128, 128)
        "f2b": jnp.asarray(_pad_lanes(np.asarray(f2b)[None, :])),
        "ew": jnp.asarray(ew_p),                               # (128, 128)
        "eb": jnp.asarray(_pad_lanes(np.asarray(eb)[None, :])),
    }


# ---------------------------------------------------------------------------
# Wrapper: one pallas_call, gridded over chunks of boxes.
#   box_block: boxes per grid step (multiple of 8). Default 256 keeps VMEM
#   well under v7x's scoped limit; on v6e/v5e it can be swept up to 512-1024
#   (raise vmem_limit_bytes accordingly). With realistic RCNN box counts this
#   also yields nblk >= 2 so v7x's two TensorCores both get work.
# ---------------------------------------------------------------------------
@functools.partial(jax.jit, static_argnames=("box_block",))
def forward_pallas(x_nchw, kp, *, box_block=256):
    B, Cin, H, W = x_nchw.shape
    Cd = kp["b1"].shape[-1] // W
    bb_cap = max(8, (box_block // 8) * 8)
    BB = min(bb_cap, -(-B // 8) * 8)          # multiple of 8, even for tiny B
    nblk = -(-B // BB)
    Bp = nblk * BB

    # layout plumbing only: NCHW -> (H, B, W*Cin); lane index = w*Cin + c
    # TODO(synk): for large B, produce activations in (H, B, W*C) layout
    # upstream (or fuse via allow_input_fusion) to avoid this extra HBM pass.
    x = jnp.transpose(x_nchw, (2, 0, 3, 1)).reshape(H, B, W * Cin)
    if Bp != B:
        x = jnp.pad(x, ((0, 0), (0, Bp - B), (0, 0)))

    kernel = functools.partial(_fused_head_kernel,
                               BB=BB, H=H, W=W, Cin=Cin, Cd=Cd)
    full2 = lambda b: (0, 0)
    full3 = lambda b: (0, 0, 0)
    out = pl.pallas_call(
        kernel,
        out_shape=jax.ShapeDtypeStruct((Bp, LANE), jnp.float32),
        grid=(nblk,),
        in_specs=[
            pl.BlockSpec((H, BB, W * Cin), lambda b: (0, b, 0)),
            pl.BlockSpec(kp["t1"].shape, full3),
            pl.BlockSpec(kp["b1"].shape, full2),
            pl.BlockSpec(kp["t2"].shape, full3),
            pl.BlockSpec(kp["b2"].shape, full2),
            pl.BlockSpec(kp["w1h"].shape, full3),
            pl.BlockSpec(kp["f1b"].shape, full2),
            pl.BlockSpec(kp["f2w"].shape, full2),
            pl.BlockSpec(kp["f2b"].shape, full2),
            pl.BlockSpec(kp["ew"].shape, full2),
            pl.BlockSpec(kp["eb"].shape, full2),
        ],
        out_specs=pl.BlockSpec((BB, LANE), lambda b: (b, 0)),
        scratch_shapes=[
            pltpu.VMEM((H + 2, BB, W * Cin), jnp.float32),   # conv1 H-halo buf
            pltpu.VMEM((H + 2, BB, W * Cd), jnp.float32),    # conv2 H-halo buf
        ],
        compiler_params=pltpu.CompilerParams(
            dimension_semantics=("parallel",),
            vmem_limit_bytes=48 * 1024 * 1024),
    )(x, kp["t1"], kp["b1"], kp["t2"], kp["b2"], kp["w1h"], kp["f1b"],
      kp["f2w"], kp["f2b"], kp["ew"], kp["eb"])
    return out[:B, :EMB_DIM]


# ---------------------------------------------------------------------------
# Parameter init (PyTorch layouts: conv HWIO, fc weights (in, out) with rows
# in NCHW-flatten order) and pure-JAX reference.
# ---------------------------------------------------------------------------
def init_params(key, in_c, h, w):
    keys = jax.random.split(key, NUM_CONV + NUM_FC + 1)
    ki = 0
    convs = []
    cin = in_c
    for _ in range(NUM_CONV):
        std = (2.0 / (9 * CONV_DIM)) ** 0.5                  # msra fan_out
        cw = jax.random.normal(keys[ki], (3, 3, cin, CONV_DIM), jnp.float32) * std
        cb = jnp.zeros((CONV_DIM,), jnp.float32)
        convs.append((cw, cb))
        cin = CONV_DIM
        ki += 1
    fcs = []
    d_in = CONV_DIM * h * w
    for _ in range(NUM_FC):
        std = (2.0 / d_in) ** 0.5                            # xavier-ish fan_in
        fw = jax.random.normal(keys[ki], (d_in, FC_DIM), jnp.float32) * std
        fb = jnp.zeros((FC_DIM,), jnp.float32)
        fcs.append((fw, fb))
        d_in = FC_DIM
        ki += 1
    ew = jax.random.normal(keys[ki], (FC_DIM, EMB_DIM), jnp.float32) * (1.0 / FC_DIM) ** 0.5
    eb = jnp.zeros((EMB_DIM,), jnp.float32)
    return {"convs": convs, "fcs": fcs, "emb": (ew, eb)}


def forward_reference(x_nchw, params):
    """Pure-JAX reference reproducing the PyTorch forward (NCHW semantics)."""
    hi = lax.Precision.HIGHEST
    x = x_nchw
    for (cw, cb) in params["convs"]:
        w_oihw = jnp.transpose(cw, (3, 2, 0, 1))
        x = lax.conv_general_dilated(
            x, w_oihw, window_strides=(1, 1), padding="SAME",
            dimension_numbers=("NCHW", "OIHW", "NCHW"), precision=hi)
        x = jax.nn.relu(x + cb.reshape(1, -1, 1, 1))
    B = x.shape[0]
    x = x.reshape(B, -1)                                     # NCHW flatten
    for (fw, fb) in params["fcs"]:
        x = jax.nn.relu(jnp.dot(x, fw, precision=hi) + fb)
    ew, eb = params["emb"]
    x = jnp.dot(x, ew, precision=hi) + eb
    nrm = jnp.sqrt(jnp.sum(x * x, axis=1, keepdims=True))
    return x / jnp.maximum(nrm, 1e-12)                       # F.normalize eps


def embedding_rcnn_inference(embeddings, num_boxes_per_image):
    # per-image split that mimics "instances.embedding = ..." (host-side only)
    splits, start = [], 0
    for n in num_boxes_per_image:
        splits.append(embeddings[start:start + n])
        start += n
    return splits


if __name__ == "__main__":
    B, C, H, W = 2, 4, 16, 16                                # B boxes, C channels
    key = jax.random.PRNGKey(0)
    kx, kpkey = jax.random.split(key)
    x = jax.random.normal(kx, (B, C, H, W), jnp.float32)
    params = init_params(kpkey, C, H, W)
    kparams = prepare_kernel_params(params, H, W)            # one-time re-layout

    emb = jax.block_until_ready(forward_pallas(x, kparams))
    ref = jax.block_until_ready(forward_reference(x, params))

    assert emb.shape == (B, EMB_DIM)
    assert jnp.allclose(emb, ref, atol=2e-4, rtol=2e-4), "mismatch vs reference"
    _ = embedding_rcnn_inference(emb, [1, 1])                # per-image split
    print("KERNEL_OK")
</pallas_src>

<mosaic_0001>
module attributes {stable_mosaic.version = 11 : i64} {
  func.func @_fused_head_kernel(%arg0: i32, %arg1: memref<16x8x64xf32, #tpu.memory_space<vmem>>, %arg2: memref<3x64x128xf32, #tpu.memory_space<vmem>>, %arg3: memref<1x128xf32, #tpu.memory_space<vmem>>, %arg4: memref<3x128x128xf32, #tpu.memory_space<vmem>>, %arg5: memref<1x128xf32, #tpu.memory_space<vmem>>, %arg6: memref<16x128x128xf32, #tpu.memory_space<vmem>>, %arg7: memref<1x128xf32, #tpu.memory_space<vmem>>, %arg8: memref<128x128xf32, #tpu.memory_space<vmem>>, %arg9: memref<1x128xf32, #tpu.memory_space<vmem>>, %arg10: memref<128x128xf32, #tpu.memory_space<vmem>>, %arg11: memref<1x128xf32, #tpu.memory_space<vmem>>, %arg12: memref<8x128xf32, #tpu.memory_space<vmem>>, %arg13: memref<18x8x64xf32, #tpu.memory_space<vmem>>, %arg14: memref<18x8x128xf32, #tpu.memory_space<vmem>>) attributes {dimension_semantics = [#tpu.dimension_semantics<parallel>], iteration_bounds = array<i64: 1>, scalar_prefetch = 0 : i64, scratch_operands = 2 : i64, tpu.core_type = #tpu.core_type<tc>, window_params = [{transform_indices = @transform_0, window_bounds = array<i64: 16, 8, 64>}, {pipeline_mode = #tpu.pipeline_mode<synchronous>, transform_indices = @transform_1, window_bounds = array<i64: 3, 64, 128>}, {pipeline_mode = #tpu.pipeline_mode<synchronous>, transform_indices = @transform_2, window_bounds = array<i64: 1, 128>}, {pipeline_mode = #tpu.pipeline_mode<synchronous>, transform_indices = @transform_3, window_bounds = array<i64: 3, 128, 128>}, {pipeline_mode = #tpu.pipeline_mode<synchronous>, transform_indices = @transform_4, window_bounds = array<i64: 1, 128>}, {pipeline_mode = #tpu.pipeline_mode<synchronous>, transform_indices = @transform_5, window_bounds = array<i64: 16, 128, 128>}, {pipeline_mode = #tpu.pipeline_mode<synchronous>, transform_indices = @transform_6, window_bounds = array<i64: 1, 128>}, {pipeline_mode = #tpu.pipeline_mode<synchronous>, transform_indices = @transform_7, window_bounds = array<i64: 128, 128>}, {pipeline_mode = #tpu.pipeline_mode<synchronous>, transform_indices = @transform_8, window_bounds = array<i64: 1, 128>}, {pipeline_mode = #tpu.pipeline_mode<synchronous>, transform_indices = @transform_9, window_bounds = array<i64: 128, 128>}, {pipeline_mode = #tpu.pipeline_mode<synchronous>, transform_indices = @transform_10, window_bounds = array<i64: 1, 128>}, {transform_indices = @transform_11, window_bounds = array<i64: 8, 128>}]} {
    %cst = arith.constant 0.000000e+00 : f32
    %0 = vector.broadcast %cst : f32 to vector<8x64xf32>
    %c0 = arith.constant 0 : index
    %c0_0 = arith.constant 0 : index
    %c0_1 = arith.constant 0 : index
    %1 = vector.load %arg13[%c0, %c0_0, %c0_1] : memref<18x8x64xf32, #tpu.memory_space<vmem>>, vector<1x8x64xf32>
    %2 = vector.shape_cast %1 : vector<1x8x64xf32> to vector<8x64xf32>
    %3 = vector.shape_cast %0 : vector<8x64xf32> to vector<1x8x64xf32>
    tpu.vector_store %arg13[%c0, %c0_0, %c0_1], %3 {strides = array<i32>} : memref<18x8x64xf32, #tpu.memory_space<vmem>>, vector<1x8x64xf32>,
    %c17 = arith.constant 17 : index
    %c0_2 = arith.constant 0 : index
    %c0_3 = arith.constant 0 : index
    %4 = vector.load %arg13[%c17, %c0_2, %c0_3] : memref<18x8x64xf32, #tpu.memory_space<vmem>>, vector<1x8x64xf32>
    %5 = vector.shape_cast %4 : vector<1x8x64xf32> to vector<8x64xf32>
    %6 = vector.shape_cast %0 : vector<8x64xf32> to vector<1x8x64xf32>
    tpu.vector_store %arg13[%c17, %c0_2, %c0_3], %6 {strides = array<i32>} : memref<18x8x64xf32, #tpu.memory_space<vmem>>, vector<1x8x64xf32>,
    %cst_4 = arith.constant 0.000000e+00 : f32
    %7 = vector.broadcast %cst_4 : f32 to vector<8x128xf32>
    %c0_5 = arith.constant 0 : index
    %c0_6 = arith.constant 0 : index
    %c0_7 = arith.constant 0 : index
    %8 = vector.load %arg14[%c0_5, %c0_6, %c0_7] : memref<18x8x128xf32, #tpu.memory_space<vmem>>, vector<1x8x128xf32>
    %9 = vector.shape_cast %8 : vector<1x8x128xf32> to vector<8x128xf32>
    %10 = vector.shape_cast %7 : vector<8x128xf32> to vector<1x8x128xf32>
    tpu.vector_store %arg14[%c0_5, %c0_6, %c0_7], %10 {strides = array<i32>} : memref<18x8x128xf32, #tpu.memory_space<vmem>>, vector<1x8x128xf32>,
    %c17_8 = arith.constant 17 : index
    %c0_9 = arith.constant 0 : index
    %c0_10 = arith.constant 0 : index
    %11 = vector.load %arg14[%c17_8, %c0_9, %c0_10] : memref<18x8x128xf32, #tpu.memory_space<vmem>>, vector<1x8x128xf32>
    %12 = vector.shape_cast %11 : vector<1x8x128xf32> to vector<8x128xf32>
    %13 = vector.shape_cast %7 : vector<8x128xf32> to vector<1x8x128xf32>
    tpu.vector_store %arg14[%c17_8, %c0_9, %c0_10], %13 {strides = array<i32>} : memref<18x8x128xf32, #tpu.memory_space<vmem>>, vector<1x8x128xf32>,
    %c0_11 = arith.constant 0 : index
    %c0_12 = arith.constant 0 : index
    %c0_13 = arith.constant 0 : index
    %14 = vector.load %arg1[%c0_11, %c0_12, %c0_13] : memref<16x8x64xf32, #tpu.memory_space<vmem>>, vector<16x8x64xf32>
    %c1 = arith.constant 1 : index
    %c0_14 = arith.constant 0 : index
    %c0_15 = arith.constant 0 : index
    %15 = vector.load %arg13[%c1, %c0_14, %c0_15] : memref<18x8x64xf32, #tpu.memory_space<vmem>>, vector<16x8x64xf32>
    tpu.vector_store %arg13[%c1, %c0_14, %c0_15], %14 {strides = array<i32>} : memref<18x8x64xf32, #tpu.memory_space<vmem>>, vector<16x8x64xf32>,
    %c0_16 = arith.constant 0 : index
    %c0_17 = arith.constant 0 : index
    %c0_18 = arith.constant 0 : index
    %16 = vector.load %arg13[%c0_16, %c0_17, %c0_18] : memref<18x8x64xf32, #tpu.memory_space<vmem>>, vector<16x8x64xf32>
    %17 = vector.shape_cast %16 : vector<16x8x64xf32> to vector<128x64xf32>
    %c0_19 = arith.constant 0 : index
    %c0_20 = arith.constant 0 : index
    %c0_21 = arith.constant 0 : index
    %18 = vector.load %arg2[%c0_19, %c0_20, %c0_21] : memref<3x64x128xf32, #tpu.memory_space<vmem>>, vector<1x64x128xf32>
    %19 = vector.shape_cast %18 : vector<1x64x128xf32> to vector<64x128xf32>
    %cst_22 = arith.constant dense<0.000000e+00> : vector<128x128xf32>
    %20 = tpu.matmul %17, %19, %cst_22 {dimension_numbers = #tpu.dot_dimension_numbers<[1], [0], [0], [1], [0, 0, 1, 1], [], []>} : vector<128x64xf32>, vector<64x128xf32>, vector<128x128xf32> -> vector<128x128xf32>
    %c1_23 = arith.constant 1 : index
    %c0_24 = arith.constant 0 : index
    %c0_25 = arith.constant 0 : index
    %21 = vector.load %arg13[%c1_23, %c0_24, %c0_25] : memref<18x8x64xf32, #tpu.memory_space<vmem>>, vector<16x8x64xf32>
    %22 = vector.shape_cast %21 : vector<16x8x64xf32> to vector<128x64xf32>
    %c1_26 = arith.constant 1 : index
    %c0_27 = arith.constant 0 : index
    %c0_28 = arith.constant 0 : index
    %23 = vector.load %arg2[%c1_26, %c0_27, %c0_28] : memref<3x64x128xf32, #tpu.memory_space<vmem>>, vector<1x64x128xf32>
    %24 = vector.shape_cast %23 : vector<1x64x128xf32> to vector<64x128xf32>
    %cst_29 = arith.constant dense<0.000000e+00> : vector<128x128xf32>
    %25 = tpu.matmul %22, %24, %cst_29 {dimension_numbers = #tpu.dot_dimension_numbers<[1], [0], [0], [1], [0, 0, 1, 1], [], []>} : vector<128x64xf32>, vector<64x128xf32>, vector<128x128xf32> -> vector<128x128xf32>
    %26 = arith.addf %20, %25 : vector<128x128xf32>
    %c2 = arith.constant 2 : index
    %c0_30 = arith.constant 0 : index
    %c0_31 = arith.constant 0 : index
    %27 = vector.load %arg13[%c2, %c0_30, %c0_31] : memref<18x8x64xf32, #tpu.memory_space<vmem>>, vector<16x8x64xf32>
    %28 = vector.shape_cast %27 : vector<16x8x64xf32> to vector<128x64xf32>
    %c2_32 = arith.constant 2 : index
    %c0_33 = arith.constant 0 : index
    %c0_34 = arith.constant 0 : index
    %29 = vector.load %arg2[%c2_32, %c0_33, %c0_34] : memref<3x64x128xf32, #tpu.memory_space<vmem>>, vector<1x64x128xf32>
    %30 = vector.shape_cast %29 : vector<1x64x128xf32> to vector<64x128xf32>
    %cst_35 = arith.constant dense<0.000000e+00> : vector<128x128xf32>
    %31 = tpu.matmul %28, %30, %cst_35 {dimension_numbers = #tpu.dot_dimension_numbers<[1], [0], [0], [1], [0, 0, 1, 1], [], []>} : vector<128x64xf32>, vector<64x128xf32>, vector<128x128xf32> -> vector<128x128xf32>
    %32 = arith.addf %26, %31 : vector<128x128xf32>
    %c0_36 = arith.constant 0 : index
    %c0_37 = arith.constant 0 : index
    %33 = vector.load %arg3[%c0_36, %c0_37] : memref<1x128xf32, #tpu.memory_space<vmem>>, vector<1x128xf32>
    %34 = vector.broadcast %33 : vector<1x128xf32> to vector<128x128xf32>
    %35 = arith.addf %32, %34 : vector<128x128xf32>
    %cst_38 = arith.constant 0.000000e+00 : f32
    %36 = vector.broadcast %cst_38 : f32 to vector<128x128xf32>
    %37 = arith.maximumf %35, %36 : vector<128x128xf32>
    %38 = vector.shape_cast %37 : vector<128x128xf32> to vector<16x8x128xf32>
    %c1_39 = arith.constant 1 : index
    %c0_40 = arith.constant 0 : index
    %c0_41 = arith.constant 0 : index
    %39 = vector.load %arg14[%c1_39, %c0_40, %c0_41] : memref<18x8x128xf32, #tpu.memory_space<vmem>>, vector<16x8x128xf32>
    tpu.vector_store %arg14[%c1_39, %c0_40, %c0_41], %38 {strides = array<i32>} : memref<18x8x128xf32, #tpu.memory_space<vmem>>, vector<16x8x128xf32>,
    %c0_42 = arith.constant 0 : index
    %c0_43 = arith.constant 0 : index
    %c0_44 = arith.constant 0 : index
    %40 = vector.load %arg14[%c0_42, %c0_43, %c0_44] : memref<18x8x128xf32, #tpu.memory_space<vmem>>, vector<16x8x128xf32>
    %41 = vector.shape_cast %40 : vector<16x8x128xf32> to vector<128x128xf32>
    %c0_45 = arith.constant 0 : index
    %c0_46 = arith.constant 0 : index
    %c0_47 = arith.constant 0 : index
    %42 = vector.load %arg4[%c0_45, %c0_46, %c0_47] : memref<3x128x128xf32, #tpu.memory_space<vmem>>, vector<1x128x128xf32>
    %43 = vector.shape_cast %42 : vector<1x128x128xf32> to vector<128x128xf32>
    %cst_48 = arith.constant dense<0.000000e+00> : vector<128x128xf32>
    %44 = tpu.matmul %41, %43, %cst_48 {dimension_numbers = #tpu.dot_dimension_numbers<[1], [0], [0], [1], [0, 0, 1, 1], [], []>} : vector<128x128xf32>, vector<128x128xf32>, vector<128x128xf32> -> vector<128x128xf32>
    %c1_49 = arith.constant 1 : index
    %c0_50 = arith.constant 0 : index
    %c0_51 = arith.constant 0 : index
    %45 = vector.load %arg14[%c1_49, %c0_50, %c0_51] : memref<18x8x128xf32, #tpu.memory_space<vmem>>, vector<16x8x128xf32>
    %46 = vector.shape_cast %45 : vector<16x8x128xf32> to vector<128x128xf32>
    %c1_52 = arith.constant 1 : index
    %c0_53 = arith.constant 0 : index
    %c0_54 = arith.constant 0 : index
    %47 = vector.load %arg4[%c1_52, %c0_53, %c0_54] : memref<3x128x128xf32, #tpu.memory_space<vmem>>, vector<1x128x128xf32>
    %48 = vector.shape_cast %47 : vector<1x128x128xf32> to vector<128x128xf32>
    %cst_55 = arith.constant dense<0.000000e+00> : vector<128x128xf32>
    %49 = tpu.matmul %46, %48, %cst_55 {dimension_numbers = #tpu.dot_dimension_numbers<[1], [0], [0], [1], [0, 0, 1, 1], [], []>} : vector<128x128xf32>, vector<128x128xf32>, vector<128x128xf32> -> vector<128x128xf32>
    %50 = arith.addf %44, %49 : vector<128x128xf32>
    %c2_56 = arith.constant 2 : index
    %c0_57 = arith.constant 0 : index
    %c0_58 = arith.constant 0 : index
    %51 = vector.load %arg14[%c2_56, %c0_57, %c0_58] : memref<18x8x128xf32, #tpu.memory_space<vmem>>, vector<16x8x128xf32>
    %52 = vector.shape_cast %51 : vector<16x8x128xf32> to vector<128x128xf32>
    %c2_59 = arith.constant 2 : index
    %c0_60 = arith.constant 0 : index
    %c0_61 = arith.constant 0 : index
    %53 = vector.load %arg4[%c2_59, %c0_60, %c0_61] : memref<3x128x128xf32, #tpu.memory_space<vmem>>, vector<1x128x128xf32>
    %54 = vector.shape_cast %53 : vector<1x128x128xf32> to vector<128x128xf32>
    %cst_62 = arith.constant dense<0.000000e+00> : vector<128x128xf32>
    %55 = tpu.matmul %52, %54, %cst_62 {dimension_numbers = #tpu.dot_dimension_numbers<[1], [0], [0], [1], [0, 0, 1, 1], [], []>} : vector<128x128xf32>, vector<128x128xf32>, vector<128x128xf32> -> vector<128x128xf32>
    %56 = arith.addf %50, %55 : vector<128x128xf32>
    %c0_63 = arith.constant 0 : index
    %c0_64 = arith.constant 0 : index
    %57 = vector.load %arg5[%c0_63, %c0_64] : memref<1x128xf32, #tpu.memory_space<vmem>>, vector<1x128xf32>
    %58 = vector.broadcast %57 : vector<1x128xf32> to vector<128x128xf32>
    %59 = arith.addf %56, %58 : vector<128x128xf32>
    %cst_65 = arith.constant 0.000000e+00 : f32
    %60 = vector.broadcast %cst_65 : f32 to vector<128x128xf32>
    %61 = arith.maximumf %59, %60 : vector<128x128xf32>
    %62 = vector.extract_strided_slice %61 {offsets = [0, 0], sizes = [8, 128], strides = [1, 1]} : vector<128x128xf32> to vector<8x128xf32>
    %c0_66 = arith.constant 0 : index
    %c0_67 = arith.constant 0 : index
    %c0_68 = arith.constant 0 : index
    %63 = vector.load %arg6[%c0_66, %c0_67, %c0_68] : memref<16x128x128xf32, #tpu.memory_space<vmem>>, vector<1x128x128xf32>
    %64 = vector.shape_cast %63 : vector<1x128x128xf32> to vector<128x128xf32>
    %cst_69 = arith.constant dense<0.000000e+00> : vector<8x128xf32>
    %65 = tpu.matmul %62, %64, %cst_69 {dimension_numbers = #tpu.dot_dimension_numbers<[1], [0], [0], [1], [0, 0, 1, 1], [], []>} : vector<8x128xf32>, vector<128x128xf32>, vector<8x128xf32> -> vector<8x128xf32>
    %66 = vector.extract_strided_slice %61 {offsets = [8, 0], sizes = [8, 128], strides = [1, 1]} : vector<128x128xf32> to vector<8x128xf32>
    %c1_70 = arith.constant 1 : index
    %c0_71 = arith.constant 0 : index
    %c0_72 = arith.constant 0 : index
    %67 = vector.load %arg6[%c1_70, %c0_71, %c0_72] : memref<16x128x128xf32, #tpu.memory_space<vmem>>, vector<1x128x128xf32>
    %68 = vector.shape_cast %67 : vector<1x128x128xf32> to vector<128x128xf32>
    %cst_73 = arith.constant dense<0.000000e+00> : vector<8x128xf32>
    %69 = tpu.matmul %66, %68, %cst_73 {dimension_numbers = #tpu.dot_dimension_numbers<[1], [0], [0], [1], [0, 0, 1, 1], [], []>} : vector<8x128xf32>, vector<128x128xf32>, vector<8x128xf32> -> vector<8x128xf32>
    %70 = arith.addf %65, %69 : vector<8x128xf32>
    %71 = vector.extract_strided_slice %61 {offsets = [16, 0], sizes = [8, 128], strides = [1, 1]} : vector<128x128xf32> to vector<8x128xf32>
    %c2_74 = arith.constant 2 : index
    %c0_75 = arith.constant 0 : index
    %c0_76 = arith.constant 0 : index
    %72 = vector.load %arg6[%c2_74, %c0_75, %c0_76] : memref<16x128x128xf32, #tpu.memory_space<vmem>>, vector<1x128x128xf32>
    %73 = vector.shape_cast %72 : vector<1x128x128xf32> to vector<128x128xf32>
    %cst_77 = arith.constant dense<0.000000e+00> : vector<8x128xf32>
    %74 = tpu.matmul %71, %73, %cst_77 {dimension_numbers = #tpu.dot_dimension_numbers<[1], [0], [0], [1], [0, 0, 1, 1], [], []>} : vector<8x128xf32>, vector<128x128xf32>, vector<8x128xf32> -> vector<8x128xf32>
    %75 = arith.addf %70, %74 : vector<8x128xf32>
    %76 = vector.extract_strided_slice %61 {offsets = [24, 0], sizes = [8, 128], strides = [1, 1]} : vector<128x128xf32> to vector<8x128xf32>
    %c3 = arith.constant 3 : index
    %c0_78 = arith.constant 0 : index
    %c0_79 = arith.constant 0 : index
    %77 = vector.load %arg6[%c3, %c0_78, %c0_79] : memref<16x128x128xf32, #tpu.memory_space<vmem>>, vector<1x128x128xf32>
    %78 = vector.shape_cast %77 : vector<1x128x128xf32> to vector<128x128xf32>
    %cst_80 = arith.constant dense<0.000000e+00> : vector<8x128xf32>
    %79 = tpu.matmul %76, %78, %cst_80 {dimension_numbers = #tpu.dot_dimension_numbers<[1], [0], [0], [1], [0, 0, 1, 1], [], []>} : vector<8x128xf32>, vector<128x128xf32>, vector<8x128xf32> -> vector<8x128xf32>
    %80 = arith.addf %75, %79 : vector<8x128xf32>
    %81 = vector.extract_strided_slice %61 {offsets = [32, 0], sizes = [8, 128], strides = [1, 1]} : vector<128x128xf32> to vector<8x128xf32>
    %c4 = arith.constant 4 : index
    %c0_81 = arith.constant 0 : index
    %c0_82 = arith.constant 0 : index
    %82 = vector.load %arg6[%c4, %c0_81, %c0_82] : memref<16x128x128xf32, #tpu.memory_space<vmem>>, vector<1x128x128xf32>
    %83 = vector.shape_cast %82 : vector<1x128x128xf32> to vector<128x128xf32>
    %cst_83 = arith.constant dense<0.000000e+00> : vector<8x128xf32>
    %84 = tpu.matmul %81, %83, %cst_83 {dimension_numbers = #tpu.dot_dimension_numbers<[1], [0], [0], [1], [0, 0, 1, 1], [], []>} : vector<8x128xf32>, vector<128x128xf32>, vector<8x128xf32> -> vector<8x128xf32>
    %85 = arith.addf %80, %84 : vector<8x128xf32>
    %86 = vector.extract_strided_slice %61 {offsets = [40, 0], sizes = [8, 128], strides = [1, 1]} : vector<128x128xf32> to vector<8x128xf32>
    %c5 = arith.constant 5 : index
    %c0_84 = arith.constant 0 : index
    %c0_85 = arith.constant 0 : index
    %87 = vector.load %arg6[%c5, %c0_84, %c0_85] : memref<16x128x128xf32, #tpu.memory_space<vmem>>, vector<1x128x128xf32>
    %88 = vector.shape_cast %87 : vector<1x128x128xf32> to vector<128x128xf32>
    %cst_86 = arith.constant dense<0.000000e+00> : vector<8x128xf32>
    %89 = tpu.matmul %86, %88, %cst_86 {dimension_numbers = #tpu.dot_dimension_numbers<[1], [0], [0], [1], [0, 0, 1, 1], [], []>} : vector<8x128xf32>, vector<128x128xf32>, vector<8x128xf32> -> vector<8x128xf32>
    %90 = arith.addf %85, %89 : vector<8x128xf32>
    %91 = vector.extract_strided_slice %61 {offsets = [48, 0], sizes = [8, 128], strides = [1, 1]} : vector<128x128xf32> to vector<8x128xf32>
    %c6 = arith.constant 6 : index
    %c0_87 = arith.constant 0 : index
    %c0_88 = arith.constant 0 : index
    %92 = vector.load %arg6[%c6, %c0_87, %c0_88] : memref<16x128x128xf32, #tpu.memory_space<vmem>>, vector<1x128x128xf32>
    %93 = vector.shape_cast %92 : vector<1x128x128xf32> to vector<128x128xf32>
    %cst_89 = arith.constant dense<0.000000e+00> : vector<8x128xf32>
    %94 = tpu.matmul %91, %93, %cst_89 {dimension_numbers = #tpu.dot_dimension_numbers<[1], [0], [0], [1], [0, 0, 1, 1], [], []>} : vector<8x128xf32>, vector<128x128xf32>, vector<8x128xf32> -> vector<8x128xf32>
    %95 = arith.addf %90, %94 : vector<8x128xf32>
    %96 = vector.extract_strided_slice %61 {offsets = [56, 0], sizes = [8, 128], strides = [1, 1]} : vector<128x128xf32> to vector<8x128xf32>
    %c7 = arith.constant 7 : index
    %c0_90 = arith.constant 0 : index
    %c0_91 = arith.constant 0 : index
    %97 = vector.load %arg6[%c7, %c0_90, %c0_91] : memref<16x128x128xf32, #tpu.memory_space<vmem>>, vector<1x128x128xf32>
    %98 = vector.shape_cast %97 : vector<1x128x128xf32> to vector<128x128xf32>
    %cst_92 = arith.constant dense<0.000000e+00> : vector<8x128xf32>
    %99 = tpu.matmul %96, %98, %cst_92 {dimension_numbers = #tpu.dot_dimension_numbers<[1], [0], [0], [1], [0, 0, 1, 1], [], []>} : vector<8x128xf32>, vector<128x128xf32>, vector<8x128xf32> -> vector<8x128xf32>
    %100 = arith.addf %95, %99 : vector<8x128xf32>
    %101 = vector.extract_strided_slice %61 {offsets = [64, 0], sizes = [8, 128], strides = [1, 1]} : vector<128x128xf32> to vector<8x128xf32>
    %c8 = arith.constant 8 : index
    %c0_93 = arith.constant 0 : index
    %c0_94 = arith.constant 0 : index
    %102 = vector.load %arg6[%c8, %c0_93, %c0_94] : memref<16x128x128xf32, #tpu.memory_space<vmem>>, vector<1x128x128xf32>
    %103 = vector.shape_cast %102 : vector<1x128x128xf32> to vector<128x128xf32>
    %cst_95 = arith.constant dense<0.000000e+00> : vector<8x128xf32>
    %104 = tpu.matmul %101, %103, %cst_95 {dimension_numbers = #tpu.dot_dimension_numbers<[1], [0], [0], [1], [0, 0, 1, 1], [], []>} : vector<8x128xf32>, vector<128x128xf32>, vector<8x128xf32> -> vector<8x128xf32>
    %105 = arith.addf %100, %104 : vector<8x128xf32>
    %106 = vector.extract_strided_slice %61 {offsets = [72, 0], sizes = [8, 128], strides = [1, 1]} : vector<128x128xf32> to vector<8x128xf32>
    %c9 = arith.constant 9 : index
    %c0_96 = arith.constant 0 : index
    %c0_97 = arith.constant 0 : index
    %107 = vector.load %arg6[%c9, %c0_96, %c0_97] : memref<16x128x128xf32, #tpu.memory_space<vmem>>, vector<1x128x128xf32>
    %108 = vector.shape_cast %107 : vector<1x128x128xf32> to vector<128x128xf32>
    %cst_98 = arith.constant dense<0.000000e+00> : vector<8x128xf32>
    %109 = tpu.matmul %106, %108, %cst_98 {dimension_numbers = #tpu.dot_dimension_numbers<[1], [0], [0], [1], [0, 0, 1, 1], [], []>} : vector<8x128xf32>, vector<128x128xf32>, vector<8x128xf32> -> vector<8x128xf32>
    %110 = arith.addf %105, %109 : vector<8x128xf32>
    %111 = vector.extract_strided_slice %61 {offsets = [80, 0], sizes = [8, 128], strides = [1, 1]} : vector<128x128xf32> to vector<8x128xf32>
    %c10 = arith.constant 10 : index
    %c0_99 = arith.constant 0 : index
    %c0_100 = arith.constant 0 : index
    %112 = vector.load %arg6[%c10, %c0_99, %c0_100] : memref<16x128x128xf32, #tpu.memory_space<vmem>>, vector<1x128x128xf32>
    %113 = vector.shape_cast %112 : vector<1x128x128xf32> to vector<128x128xf32>
    %cst_101 = arith.constant dense<0.000000e+00> : vector<8x128xf32>
    %114 = tpu.matmul %111, %113, %cst_101 {dimension_numbers = #tpu.dot_dimension_numbers<[1], [0], [0], [1], [0, 0, 1, 1], [], []>} : vector<8x128xf32>, vector<128x128xf32>, vector<8x128xf32> -> vector<8x128xf32>
    %115 = arith.addf %110, %114 : vector<8x128xf32>
    %116 = vector.extract_strided_slice %61 {offsets = [88, 0], sizes = [8, 128], strides = [1, 1]} : vector<128x128xf32> to vector<8x128xf32>
    %c11 = arith.constant 11 : index
    %c0_102 = arith.constant 0 : index
    %c0_103 = arith.constant 0 : index
    %117 = vector.load %arg6[%c11, %c0_102, %c0_103] : memref<16x128x128xf32, #tpu.memory_space<vmem>>, vector<1x128x128xf32>
    %118 = vector.shape_cast %117 : vector<1x128x128xf32> to vector<128x128xf32>
    %cst_104 = arith.constant dense<0.000000e+00> : vector<8x128xf32>
    %119 = tpu.matmul %116, %118, %cst_104 {dimension_numbers = #tpu.dot_dimension_numbers<[1], [0], [0], [1], [0, 0, 1, 1], [], []>} : vector<8x128xf32>, vector<128x128xf32>, vector<8x128xf32> -> vector<8x128xf32>
    %120 = arith.addf %115, %119 : vector<8x128xf32>
    %121 = vector.extract_strided_slice %61 {offsets = [96, 0], sizes = [8, 128], strides = [1, 1]} : vector<128x128xf32> to vector<8x128xf32>
    %c12 = arith.constant 12 : index
    %c0_105 = arith.constant 0 : index
    %c0_106 = arith.constant 0 : index
    %122 = vector.load %arg6[%c12, %c0_105, %c0_106] : memref<16x128x128xf32, #tpu.memory_space<vmem>>, vector<1x128x128xf32>
    %123 = vector.shape_cast %122 : vector<1x128x128xf32> to vector<128x128xf32>
    %cst_107 = arith.constant dense<0.000000e+00> : vector<8x128xf32>
    %124 = tpu.matmul %121, %123, %cst_107 {dimension_numbers = #tpu.dot_dimension_numbers<[1], [0], [0], [1], [0, 0, 1, 1], [], []>} : vector<8x128xf32>, vector<128x128xf32>, vector<8x128xf32> -> vector<8x128xf32>
    %125 = arith.addf %120, %124 : vector<8x128xf32>
    %126 = vector.extract_strided_slice %61 {offsets = [104, 0], sizes = [8, 128], strides = [1, 1]} : vector<128x128xf32> to vector<8x128xf32>
    %c13 = arith.constant 13 : index
    %c0_108 = arith.constant 0 : index
    %c0_109 = arith.constant 0 : index
    %127 = vector.load %arg6[%c13, %c0_108, %c0_109] : memref<16x128x128xf32, #tpu.memory_space<vmem>>, vector<1x128x128xf32>
    %128 = vector.shape_cast %127 : vector<1x128x128xf32> to vector<128x128xf32>
    %cst_110 = arith.constant dense<0.000000e+00> : vector<8x128xf32>
    %129 = tpu.matmul %126, %128, %cst_110 {dimension_numbers = #tpu.dot_dimension_numbers<[1], [0], [0], [1], [0, 0, 1, 1], [], []>} : vector<8x128xf32>, vector<128x128xf32>, vector<8x128xf32> -> vector<8x128xf32>
    %130 = arith.addf %125, %129 : vector<8x128xf32>
    %131 = vector.extract_strided_slice %61 {offsets = [112, 0], sizes = [8, 128], strides = [1, 1]} : vector<128x128xf32> to vector<8x128xf32>
    %c14 = arith.constant 14 : index
    %c0_111 = arith.constant 0 : index
    %c0_112 = arith.constant 0 : index
    %132 = vector.load %arg6[%c14, %c0_111, %c0_112] : memref<16x128x128xf32, #tpu.memory_space<vmem>>, vector<1x128x128xf32>
    %133 = vector.shape_cast %132 : vector<1x128x128xf32> to vector<128x128xf32>
    %cst_113 = arith.constant dense<0.000000e+00> : vector<8x128xf32>
    %134 = tpu.matmul %131, %133, %cst_113 {dimension_numbers = #tpu.dot_dimension_numbers<[1], [0], [0], [1], [0, 0, 1, 1], [], []>} : vector<8x128xf32>, vector<128x128xf32>, vector<8x128xf32> -> vector<8x128xf32>
    %135 = arith.addf %130, %134 : vector<8x128xf32>
    %136 = vector.extract_strided_slice %61 {offsets = [120, 0], sizes = [8, 128], strides = [1, 1]} : vector<128x128xf32> to vector<8x128xf32>
    %c15 = arith.constant 15 : index
    %c0_114 = arith.constant 0 : index
    %c0_115 = arith.constant 0 : index
    %137 = vector.load %arg6[%c15, %c0_114, %c0_115] : memref<16x128x128xf32, #tpu.memory_space<vmem>>, vector<1x128x128xf32>
    %138 = vector.shape_cast %137 : vector<1x128x128xf32> to vector<128x128xf32>
    %cst_116 = arith.constant dense<0.000000e+00> : vector<8x128xf32>
    %139 = tpu.matmul %136, %138, %cst_116 {dimension_numbers = #tpu.dot_dimension_numbers<[1], [0], [0], [1], [0, 0, 1, 1], [], []>} : vector<8x128xf32>, vector<128x128xf32>, vector<8x128xf32> -> vector<8x128xf32>
    %140 = arith.addf %135, %139 : vector<8x128xf32>
    %c0_117 = arith.constant 0 : index
    %c0_118 = arith.constant 0 : index
    %141 = vector.load %arg7[%c0_117, %c0_118] : memref<1x128xf32, #tpu.memory_space<vmem>>, vector<1x128xf32>
    %142 = vector.broadcast %141 : vector<1x128xf32> to vector<8x128xf32>
    %143 = arith.addf %140, %142 : vector<8x128xf32>
    %cst_119 = arith.constant 0.000000e+00 : f32
    %144 = vector.broadcast %cst_119 : f32 to vector<8x128xf32>
    %145 = arith.maximumf %143, %144 : vector<8x128xf32>
    %c0_120 = arith.constant 0 : index
    %c0_121 = arith.constant 0 : index
    %146 = vector.load %arg8[%c0_120, %c0_121] : memref<128x128xf32, #tpu.memory_space<vmem>>, vector<128x128xf32>
    %cst_122 = arith.constant dense<0.000000e+00> : vector<8x128xf32>
    %147 = tpu.matmul %145, %146, %cst_122 {dimension_numbers = #tpu.dot_dimension_numbers<[1], [0], [0], [1], [0, 0, 1, 1], [], []>} : vector<8x128xf32>, vector<128x128xf32>, vector<8x128xf32> -> vector<8x128xf32>
    %c0_123 = arith.constant 0 : index
    %c0_124 = arith.constant 0 : index
    %148 = vector.load %arg9[%c0_123, %c0_124] : memref<1x128xf32, #tpu.memory_space<vmem>>, vector<1x128xf32>
    %149 = vector.broadcast %148 : vector<1x128xf32> to vector<8x128xf32>
    %150 = arith.addf %147, %149 : vector<8x128xf32>
    %cst_125 = arith.constant 0.000000e+00 : f32
    %151 = vector.broadcast %cst_125 : f32 to vector<8x128xf32>
    %152 = arith.maximumf %150, %151 : vector<8x128xf32>
    %c0_126 = arith.constant 0 : index
    %c0_127 = arith.constant 0 : index
    %153 = vector.load %arg10[%c0_126, %c0_127] : memref<128x128xf32, #tpu.memory_space<vmem>>, vector<128x128xf32>
    %cst_128 = arith.constant dense<0.000000e+00> : vector<8x128xf32>
    %154 = tpu.matmul %152, %153, %cst_128 {dimension_numbers = #tpu.dot_dimension_numbers<[1], [0], [0], [1], [0, 0, 1, 1], [], []>} : vector<8x128xf32>, vector<128x128xf32>, vector<8x128xf32> -> vector<8x128xf32>
    %c0_129 = arith.constant 0 : index
    %c0_130 = arith.constant 0 : index
    %155 = vector.load %arg11[%c0_129, %c0_130] : memref<1x128xf32, #tpu.memory_space<vmem>>, vector<1x128xf32>
    %156 = vector.broadcast %155 : vector<1x128xf32> to vector<8x128xf32>
    %157 = arith.addf %154, %156 : vector<8x128xf32>
    %158 = arith.mulf %157, %157 : vector<8x128xf32>
    %cst_131 = arith.constant dense<0.000000e+00> : vector<8xf32>
    %159 = vector.multi_reduction <add>, %158, %cst_131 [1] : vector<8x128xf32> to vector<8xf32>
    %160 = vector.shape_cast %159 : vector<8xf32> to vector<8x1xf32>
    %cst_132 = arith.constant 1.000000e-24 : f32
    %161 = vector.broadcast %cst_132 : f32 to vector<8x1xf32>
    %162 = arith.maximumf %160, %161 : vector<8x1xf32>
    %163 = math.rsqrt %162 : vector<8x1xf32>
    %164 = vector.broadcast %163 : vector<8x1xf32> to vector<8x128xf32>
    %165 = arith.mulf %157, %164 : vector<8x128xf32>
    %c0_133 = arith.constant 0 : index
    %c0_134 = arith.constant 0 : index
    %166 = vector.load %arg12[%c0_133, %c0_134] : memref<8x128xf32, #tpu.memory_space<vmem>>, vector<8x128xf32>
    tpu.vector_store %arg12[%c0_133, %c0_134], %165 {strides = array<i32>} : memref<8x128xf32, #tpu.memory_space<vmem>>, vector<8x128xf32>,
    return
  }
  func.func @transform_0(%arg0: i32) -> (i32, i32, i32) {
    %c0_i32 = arith.constant 0 : i32
    %c0_i32_0 = arith.constant 0 : i32
    %c0_i32_1 = arith.constant 0 : i32
    return %c0_i32, %arg0, %c0_i32_0 : i32, i32, i32
  }
  func.func @transform_1(%arg0: i32) -> (i32, i32, i32) {
    %c0_i32 = arith.constant 0 : i32
    %c0_i32_0 = arith.constant 0 : i32
    %c0_i32_1 = arith.constant 0 : i32
    %c0_i32_2 = arith.constant 0 : i32
    return %c0_i32, %c0_i32_0, %c0_i32_1 : i32, i32, i32
  }
  func.func @transform_2(%arg0: i32) -> (i32, i32) {
    %c0_i32 = arith.constant 0 : i32
    %c0_i32_0 = arith.constant 0 : i32
    %c0_i32_1 = arith.constant 0 : i32
    return %c0_i32, %c0_i32_0 : i32, i32
  }
  func.func @transform_3(%arg0: i32) -> (i32, i32, i32) {
    %c0_i32 = arith.constant 0 : i32
    %c0_i32_0 = arith.constant 0 : i32
    %c0_i32_1 = arith.constant 0 : i32
    %c0_i32_2 = arith.constant 0 : i32
    return %c0_i32, %c0_i32_0, %c0_i32_1 : i32, i32, i32
  }
  func.func @transform_4(%arg0: i32) -> (i32, i32) {
    %c0_i32 = arith.constant 0 : i32
    %c0_i32_0 = arith.constant 0 : i32
    %c0_i32_1 = arith.constant 0 : i32
    return %c0_i32, %c0_i32_0 : i32, i32
  }
  func.func @transform_5(%arg0: i32) -> (i32, i32, i32) {
    %c0_i32 = arith.constant 0 : i32
    %c0_i32_0 = arith.constant 0 : i32
    %c0_i32_1 = arith.constant 0 : i32
    %c0_i32_2 = arith.constant 0 : i32
    return %c0_i32, %c0_i32_0, %c0_i32_1 : i32, i32, i32
  }
  func.func @transform_6(%arg0: i32) -> (i32, i32) {
    %c0_i32 = arith.constant 0 : i32
    %c0_i32_0 = arith.constant 0 : i32
    %c0_i32_1 = arith.constant 0 : i32
    return %c0_i32, %c0_i32_0 : i32, i32
  }
  func.func @transform_7(%arg0: i32) -> (i32, i32) {
    %c0_i32 = arith.constant 0 : i32
    %c0_i32_0 = arith.constant 0 : i32
    %c0_i32_1 = arith.constant 0 : i32
    return %c0_i32, %c0_i32_0 : i32, i32
  }
  func.func @transform_8(%arg0: i32) -> (i32, i32) {
    %c0_i32 = arith.constant 0 : i32
    %c0_i32_0 = arith.constant 0 : i32
    %c0_i32_1 = arith.constant 0 : i32
    return %c0_i32, %c0_i32_0 : i32, i32
  }
  func.func @transform_9(%arg0: i32) -> (i32, i32) {
    %c0_i32 = arith.constant 0 : i32
    %c0_i32_0 = arith.constant 0 : i32
    %c0_i32_1 = arith.constant 0 : i32
    return %c0_i32, %c0_i32_0 : i32, i32
  }
  func.func @transform_10(%arg0: i32) -> (i32, i32) {
    %c0_i32 = arith.constant 0 : i32
    %c0_i32_0 = arith.constant 0 : i32
    %c0_i32_1 = arith.constant 0 : i32
    return %c0_i32, %c0_i32_0 : i32, i32
  }
  func.func @transform_11(%arg0: i32) -> (i32, i32) {
    %c0_i32 = arith.constant 0 : i32
    %c0_i32_0 = arith.constant 0 : i32
    return %arg0, %c0_i32 : i32, i32
  }
}

</mosaic_0001>

<bundles_post_ra>
// kernel: forward_pallas.1
= control target key start
LH: loop header
LB: loop body
LE: loop exit
PB: predicated region body
PF: predicated region fallthrough
CT: control target
= control target key end

     0   :  { %16 = vsyncpa [#allocation5], 0  ;;  %s2340_s0 = inlined_call_operand.vmem [shape: f32[16,8,64], index: 0, kind: input, shape index: {}]   ;;  %s2341_s1 = inlined_call_operand.vmem [shape: f32[3,64,128], index: 1, kind: input, shape index: {}]   ;;  %s2342_s2 = inlined_call_operand.vmem [shape: f32[1,128], index: 2, kind: input, shape index: {}]   ;;  %s2343_s3 = inlined_call_operand.vmem [shape: f32[3,128,128], index: 3, kind: input, shape index: {}]   ;;  %s2344_s4 = inlined_call_operand.vmem [shape: f32[1,128], index: 4, kind: input, shape index: {}]   ;;  %s2345_s5 = inlined_call_operand.hbm [shape: f32[16,128,128], index: 5, kind: input, shape index: {}]   ;;  %s2346_s6 = inlined_call_operand.vmem [shape: f32[1,128], index: 6, kind: input, shape index: {}]   ;;  %s2347_s7 = inlined_call_operand.hbm [shape: f32[128,128], index: 7, kind: input, shape index: {}]   ;;  %s2348_s8 = inlined_call_operand.vmem [shape: f32[1,128], index: 8, kind: input, shape index: {}]   ;;  %s2349_s9 = inlined_call_operand.hbm [shape: f32[128,128], index: 9, kind: input, shape index: {}]   ;;  %s2350_s10 = inlined_call_operand.vmem [shape: f32[1,128], index: 10, kind: input, shape index: {}]   ;;  %s2351_s11 = inlined_call_operand.vmem [shape: f32[8,128], index: 11, kind: output, shape index: {}]  }
   0x1   :  { %17 = vsyncpa [#allocation7], 0  ;;  %s47_s19 = sshll.u32 %s2347_s7, 4  ;;  %s1853_s20 = smov [#allocation6]   ;;  %s48_s19 = int_to_ptr.hbm [resolvable:$true] %s47_s19 }
   0x2   :  { %s49_s21 = sshll.u32 %s1853_s20, 4  ;;  %s32_s24 = sshll.u32 %s2345_s5, 4  ;;  %s50_s21 = int_to_ptr.vmem [resolvable:$true] %s49_s21  ;;  %s33_s24 = int_to_ptr.hbm [resolvable:$true] %s32_s24 }
   0x3   :  { %s1854_s25 = smov 128   ;;  %s1855_s26 = smov 8  }
   0x4   :  { %55 = dma.hbm_to_vmem [thread:$0]  %s48_s19, 2048, %s50_s21, [#allocation7], %s1854_s25, %s1854_s25, %s1855_s26  }
   0x5   :  { %s1856_s27 = smov [#allocation4]   ;;  %s62_s12 = sshll.u32 %s2349_s9, 4  ;;  %s63_s12 = int_to_ptr.hbm [resolvable:$true] %s62_s12 }
   0x6   :  { %s34_s28 = sshll.u32 %s1856_s27, 4  ;;  %s1857_s7 = smov [#allocation8]   ;;  %s35_s28 = int_to_ptr.vmem [resolvable:$true] %s34_s28 }
   0x7   :  { %40 = dma.hbm_to_vmem [thread:$0]  %s33_s24, 32768, %s35_s28, [#allocation5], %s1854_s25, %s1854_s25, %s1855_s26  }
   0x8   :  { %s64_s13 = sshll.u32 %s1857_s7, 4  ;;  %s65_s13 = int_to_ptr.vmem [resolvable:$true] %s64_s13 }
   0x9   :  { %70 = dma.hbm_to_vmem [thread:$0]  %s63_s12, 2048, %s65_s13, [#allocation7], %s1854_s25, %s1854_s25, %s1855_s26  }
   0xa   :  { %1849 = dma.done.wait [#allocation5], 32768  }
   0xb   :  { %1850 = vsyncadd [#allocation5], 4294934528 }
   0xc   :  { %1851 = dma.done.wait [#allocation7], 4096  }
   0xd   :  { %1852 = vsyncadd [#allocation7], 4294963200  ;;  %vm85_vm0 = vcmask 523264   ;;  %v1858_v0 = vmov 0.0   ;;  %v1715_v1 = vld [vmem:[%s2341_s1 + $0xb8] sm:$0xff]  ;;  %v1714_v3 = vld [vmem:[%s2341_s1 + $0xb0] sm:$0xff] }
   0xe   :  { %86 = vst.msk [vmem:[#allocation2] sm:$0xff] %vm85_vm0, %v1858_v0  ;;  %v1675_v2 = vld [vmem:[%s2341_s1 + $0x78] sm:$0xff]  ;;  %482 = vmatpush.msra.mxu2 %v1715_v1  ;;  %v1674_v4 = vld [vmem:[%s2341_s1 + $0x70] sm:$0xff]  ;;  %v1713_v6 = vld [vmem:[%s2341_s1 + $0xa8] sm:$0xff] }
   0xf   :  { %88 = vst.msk [vmem:[#allocation2 + $0x88] sm:$0xff] %vm85_vm0, %v1858_v0  ;;  %230 = vmatpush.msra.mxu0 %v1675_v2  ;;  %v148_v5 = vld [vmem:[%s2341_s1 + $0x38] sm:$0xff]  ;;  %v1673_v7 = vld [vmem:[%s2341_s1 + $0x68] sm:$0xff]  ;;  %v147_v8 = vld [vmem:[%s2341_s1 + $0x30] sm:$0xff] }
  0x10   :  { %343 = vmatpush.msra.mxu1 %v148_v5  ;;  %483 = vmatpush.msra.mxu2 %v1714_v3  ;;  %v146_v9 = vld [vmem:[%s2341_s1 + $0x28] sm:$0xff]  ;;  %v1712_v10 = vld [vmem:[%s2341_s1 + $0xa0] sm:$0xff]  ;;  %v1711_v13 = vld [vmem:[%s2341_s1 + $0x98] sm:$0xff] }
  0x11   :  { %231 = vmatpush.msra.mxu0 %v1674_v4  ;;  %v1672_v11 = vld [vmem:[%s2341_s1 + $0x60] sm:$0xff]  ;;  %v1671_v14 = vld [vmem:[%s2341_s1 + $0x58] sm:$0xff]  ;;  %v1710_v15 = vld [vmem:[%s2341_s1 + $0x90] sm:$0xff] }
  0x12   :  { %344 = vmatpush.msra.mxu1 %v147_v8  ;;  %484 = vmatpush.msra.mxu2 %v1713_v6  ;;  %v145_v12 = vld [vmem:[%s2341_s1 + $0x20] sm:$0xff]  ;;  %v1670_v16 = vld [vmem:[%s2341_s1 + $0x50] sm:$0xff]  ;;  %v144_v17 = vld [vmem:[%s2341_s1 + $0x18] sm:$0xff] }
  0x13   :  { %232 = vmatpush.msra.mxu0 %v1673_v7  ;;  %v93_v18 = vld [vmem:[%s2340_s0 + $0x8] sm:$0xff]  ;;  %v143_v21 = vld [vmem:[%s2341_s1 + $0x10] sm:$0xff]  ;;  %v92_v22 = vld [vmem:[%s2340_s0] sm:$0xff] }
  0x14   :  { %345 = vmatpush.msra.mxu1 %v146_v9  ;;  %485 = vmatpush.msra.mxu2 %v1712_v10  ;;  %v1709_v19 = vld [vmem:[%s2341_s1 + $0x88] sm:$0xff]  ;;  %110 = vst.msk [vmem:[#allocation2 + $0x10] sm:$0xff] %vm85_vm0, %v93_v18  ;;  %v94_v23 = vld [vmem:[%s2340_s0 + $0x10] sm:$0xff]  ;;  %v95_v24 = vld [vmem:[%s2340_s0 + $0x18] sm:$0xff] }
  0x15   :  { %233 = vmatpush.msra.mxu0 %v1672_v11  ;;  %v1669_v20 = vld [vmem:[%s2341_s1 + $0x48] sm:$0xff]  ;;  %109 = vst.msk [vmem:[#allocation2 + $0x8] sm:$0xff] %vm85_vm0, %v92_v22  ;;  %v96_v25 = vld [vmem:[%s2340_s0 + $0x20] sm:$0xff]  ;;  %v639_v33 = vld [vmem:[%s2343_s3 + $0x78] sm:$0xff] }
  0x16   :  { %346 = vmatpush.msra.mxu1 %v145_v12  ;;  %486 = vmatpush.msra.mxu2 %v1711_v13  ;;  %v1708_v26 = vld [vmem:[%s2341_s1 + $0x80] sm:$0xff]  ;;  %111 = vst.msk [vmem:[#allocation2 + $0x18] sm:$0xff] %vm85_vm0, %v94_v23  ;;  %v97_v27 = vld [vmem:[%s2340_s0 + $0x28] sm:$0xff]  ;;  %v98_v34 = vld [vmem:[%s2340_s0 + $0x30] sm:$0xff] }
  0x17   :  { %234 = vmatpush.msra.mxu0 %v1671_v14  ;;  %v142_v28 = vld [vmem:[%s2341_s1 + $0x8] sm:$0xff]  ;;  %112 = vst.msk [vmem:[#allocation2 + $0x20] sm:$0xff] %vm85_vm0, %v95_v24  ;;  %v1668_v29 = vld [vmem:[%s2341_s1 + $0x40] sm:$0xff]  ;;  %v1763_v36 = vld [vmem:[%s2343_s3 + $0x178] sm:$0xff] }
  0x18   :  { %347 = vmatpush.msra.mxu1 %v144_v17  ;;  %487 = vmatpush.msra.mxu2 %v1710_v15  ;;  %113 = vst.msk [vmem:[#allocation2 + $0x28] sm:$0xff] %vm85_vm0, %v96_v25  ;;  %v141_v30 = vld [vmem:[%s2341_s1] sm:$0xff]  ;;  %v638_v37 = vld [vmem:[%s2343_s3 + $0x70] sm:$0xff]  ;;  %v99_v39 = vld [vmem:[%s2340_s0 + $0x38] sm:$0xff] }
  0x19   :  { %235 = vmatpush.msra.mxu0 %v1670_v16  ;;  %114 = vst.msk [vmem:[#allocation2 + $0x30] sm:$0xff] %vm85_vm0, %v97_v27  ;;  %v125_v31 = vld [vmem:[#allocation2] sm:$0xff]  ;;  %v1762_v40 = vld [vmem:[%s2343_s3 + $0x170] sm:$0xff]  ;;  %v637_v41 = vld [vmem:[%s2343_s3 + $0x68] sm:$0xff] }
  0x1a   :  { %348 = vmatpush.msra.mxu1 %v143_v21  ;;  %488 = vmatpush.msra.mxu2 %v1709_v19  ;;  %115 = vst.msk [vmem:[#allocation2 + $0x38] sm:$0xff] %vm85_vm0, %v98_v34  ;;  %v100_v43 = vld [vmem:[%s2340_s0 + $0x40] sm:$0xff]  ;;  %v1761_v44 = vld [vmem:[%s2343_s3 + $0x168] sm:$0xff]  ;;  %v635_v49 = vld [vmem:[%s2343_s3 + $0x58] sm:$0xff] }
  0x1b   :  { %236 = vmatpush.msra.mxu0 %v1669_v20  ;;  %v401_v32 = vld [vmem:[#allocation2 + $0x10] sm:$0xff]  ;;  %116 = vst.msk [vmem:[#allocation2 + $0x40] sm:$0xff] %vm85_vm0, %v99_v39  ;;  %v636_v45 = vld [vmem:[%s2343_s3 + $0x60] sm:$0xff]  ;;  %v101_v47 = vld [vmem:[%s2340_s0 + $0x48] sm:$0xff] }
  0x1c   :  { %349 = vmatpush.msra.mxu1 %v142_v28  ;;  %489 = vmatpush.msra.mxu2 %v1708_v26  ;;  %v149_v35 = vld [vmem:[#allocation2 + $0x8] sm:$0xff]  ;;  %117 = vst.msk [vmem:[#allocation2 + $0x48] sm:$0xff] %vm85_vm0, %v100_v43  ;;  %v1760_v48 = vld [vmem:[%s2343_s3 + $0x160] sm:$0xff]  ;;  %v102_v51 = vld [vmem:[%s2340_s0 + $0x50] sm:$0xff] }
  0x1d   :  { %237 = vmatpush.msra.mxu0 %v1668_v29  ;;  %1716 = vmatmul.msk.f32.vlgmr.msra.gmra.mxu2 %vm85_vm0, %v401_v32  ;;  %v402_v38 = vld [vmem:[#allocation2 + $0x18] sm:$0xff]  ;;  %118 = vst.msk [vmem:[#allocation2 + $0x50] sm:$0xff] %vm85_vm0, %v101_v47  ;;  %v634_v53 = vld [vmem:[%s2343_s3 + $0x50] sm:$0xff]  ;;  %v633_v57 = vld [vmem:[%s2343_s3 + $0x48] sm:$0xff] }
  0x1e   :  { %350 = vmatpush.msra.mxu1 %v141_v30  ;;  %1676 = vmatmul.msk.f32.vlgmr.msra.gmra.mxu0 %vm85_vm0, %v149_v35  ;;  %v403_v42 = vld [vmem:[#allocation2 + $0x20] sm:$0xff]  ;;  %v1759_v52 = vld [vmem:[%s2343_s3 + $0x158] sm:$0xff]  ;;  %119 = vst.msk [vmem:[#allocation2 + $0x58] sm:$0xff] %vm85_vm0, %v102_v51  ;;  %v1758_v56 = vld [vmem:[%s2343_s3 + $0x150] sm:$0xff] }
  0x1f   :  { %1692 = vmatmul.msk.f32.vlgmr.msra.gmra.mxu1 %vm85_vm0, %v125_v31  ;;  %738 = vmatpush.msrb.mxu0 %v639_v33  ;;  %v404_v46 = vld [vmem:[#allocation2 + $0x28] sm:$0xff]  ;;  %v103_v55 = vld [vmem:[%s2340_s0 + $0x58] sm:$0xff]  ;;  %v104_v59 = vld [vmem:[%s2340_s0 + $0x60] sm:$0xff] }
  0x20   :  { %837 = vmatpush.msrb.mxu1 %v1763_v36  ;;  %v405_v50 = vld [vmem:[#allocation2 + $0x30] sm:$0xff]  ;;  %120 = vst.msk [vmem:[#allocation2 + $0x60] sm:$0xff] %vm85_vm0, %v103_v55  ;;  %v1757_v60 = vld [vmem:[%s2343_s3 + $0x148] sm:$0xff]  ;;  %v632_v61 = vld [vmem:[%s2343_s3 + $0x40] sm:$0xff] }
  0x21   :  { %739 = vmatpush.msrb.mxu0 %v638_v37  ;;  %v406_v54 = vld [vmem:[#allocation2 + $0x38] sm:$0xff]  ;;  %121 = vst.msk [vmem:[#allocation2 + $0x68] sm:$0xff] %vm85_vm0, %v104_v59  ;;  %v105_v63 = vld [vmem:[%s2340_s0 + $0x68] sm:$0xff]  ;;  %v1756_v1 = vld [vmem:[%s2343_s3 + $0x140] sm:$0xff] }
  0x22   :  { %838 = vmatpush.msrb.mxu1 %v1762_v40  ;;  %v407_v58 = vld [vmem:[#allocation2 + $0x40] sm:$0xff]  ;;  %122 = vst.msk [vmem:[#allocation2 + $0x70] sm:$0xff] %vm85_vm0, %v105_v63  ;;  %v631_v2 = vld [vmem:[%s2343_s3 + $0x38] sm:$0xff]  ;;  %v106_v4 = vld [vmem:[%s2340_s0 + $0x70] sm:$0xff] }
  0x23   :  { %740 = vmatpush.msrb.mxu0 %v637_v41  ;;  %v408_v62 = vld [vmem:[#allocation2 + $0x48] sm:$0xff]  ;;  %v1755_v5 = vld [vmem:[%s2343_s3 + $0x138] sm:$0xff]  ;;  %123 = vst.msk [vmem:[#allocation2 + $0x78] sm:$0xff] %vm85_vm0, %v106_v4  ;;  %v630_v6 = vld [vmem:[%s2343_s3 + $0x30] sm:$0xff] }
  0x24   :  { %839 = vmatpush.msrb.mxu1 %v1761_v44  ;;  %v409_v3 = vld [vmem:[#allocation2 + $0x50] sm:$0xff]  ;;  %v107_v8 = vld [vmem:[%s2340_s0 + $0x78] sm:$0xff]  ;;  %v629_v12 = vld [vmem:[%s2343_s3 + $0x28] sm:$0xff] }
  0x25   :  { %1717 = vmatmul.msk.f32.gmra.mxu2 %vm85_vm0, %v402_v38  ;;  %741 = vmatpush.msrb.mxu0 %v636_v45  ;;  %v410_v7 = vld [vmem:[#allocation2 + $0x58] sm:$0xff]  ;;  %v1754_v9 = vld [vmem:[%s2343_s3 + $0x130] sm:$0xff]  ;;  %124 = vst.msk [vmem:[#allocation2 + $0x80] sm:$0xff] %vm85_vm0, %v107_v8  ;;  %v1745_v13 = vld [vmem:[%s2343_s3 + $0xe8] sm:$0xff] }
  0x26   :  { %1677 = vmatmul.msk.f32.gmra.mxu0 %vm85_vm0, %v401_v32  ;;  %840 = vmatpush.msrb.mxu1 %v1760_v48  ;;  %v1747_v10 = vld [vmem:[%s2343_s3 + $0xf8] sm:$0xff]  ;;  %v1746_v11 = vld [vmem:[%s2343_s3 + $0xf0] sm:$0xff]  ;;  %v1753_v15 = vld [vmem:[%s2343_s3 + $0x128] sm:$0xff] }
  0x27   :  { %1693 = vmatmul.msk.f32.gmra.mxu1 %vm85_vm0, %v149_v35  ;;  %742 = vmatpush.msrb.mxu0 %v635_v49  ;;  %v411_v14 = vld [vmem:[#allocation2 + $0x60] sm:$0xff]  ;;  %v1743_v17 = vld [vmem:[%s2343_s3 + $0xd8] sm:$0xff]  ;;  %v1742_v19 = vld [vmem:[%s2343_s3 + $0xd0] sm:$0xff] }
  0x28   :  { %841 = vmatpush.msrb.mxu1 %v1759_v52  ;;  %673 = vmatpush.msra.mxu3 %v1747_v10  ;;  %v1744_v16 = vld [vmem:[%s2343_s3 + $0xe0] sm:$0xff]  ;;  %v412_v20 = vld [vmem:[#allocation2 + $0x68] sm:$0xff]  ;;  %v1739_v24 = vld [vmem:[%s2343_s3 + $0xb8] sm:$0xff] }
  0x29   :  { %743 = vmatpush.msrb.mxu0 %v634_v53  ;;  %v628_v18 = vld [vmem:[%s2343_s3 + $0x20] sm:$0xff]  ;;  %v1741_v21 = vld [vmem:[%s2343_s3 + $0xc8] sm:$0xff]  ;;  %v627_v25 = vld [vmem:[%s2343_s3 + $0x18] sm:$0xff] }
  0x2a   :  { %842 = vmatpush.msrb.mxu1 %v1758_v56  ;;  %674 = vmatpush.msra.mxu3 %v1746_v11  ;;  %v1752_v22 = vld [vmem:[%s2343_s3 + $0x120] sm:$0xff]  ;;  %v626_v26 = vld [vmem:[%s2343_s3 + $0x10] sm:$0xff]  ;;  %v1737_v29 = vld [vmem:[%s2343_s3 + $0xa8] sm:$0xff] }
  0x2b   :  { %744 = vmatpush.msrb.mxu0 %v633_v57  ;;  %v1740_v23 = vld [vmem:[%s2343_s3 + $0xc0] sm:$0xff]  ;;  %v1738_v27 = vld [vmem:[%s2343_s3 + $0xb0] sm:$0xff]  ;;  %v625_v30 = vld [vmem:[%s2343_s3 + $0x8] sm:$0xff] }
  0x2c   :  { %843 = vmatpush.msrb.mxu1 %v1757_v60  ;;  %675 = vmatpush.msra.mxu3 %v1745_v13  ;;  %v413_v28 = vld [vmem:[#allocation2 + $0x70] sm:$0xff]  ;;  %v1751_v31 = vld [vmem:[%s2343_s3 + $0x118] sm:$0xff]  ;;  %v624_v33 = vld [vmem:[%s2343_s3] sm:$0xff] }
  0x2d   :  { %1718 = vmatmul.msk.f32.gmra.mxu2 %vm85_vm0, %v403_v42  ;;  %745 = vmatpush.msrb.mxu0 %v632_v61  ;;  %v1735_v34 = vld [vmem:[%s2343_s3 + $0x98] sm:$0xff]  ;;  %v1734_v35 = vld [vmem:[%s2343_s3 + $0x90] sm:$0xff]  ;;  %v1733_v37 = vld [vmem:[%s2343_s3 + $0x88] sm:$0xff] }
  0x2e   :  { %1678 = vmatmul.msk.f32.gmra.mxu0 %vm85_vm0, %v402_v38  ;;  %844 = vmatpush.msrb.mxu1 %v1756_v1  ;;  %v414_v36 = vld [vmem:[#allocation2 + $0x78] sm:$0xff]  ;;  %v1732_v39 = vld [vmem:[%s2343_s3 + $0x80] sm:$0xff]  ;;  %v1749_v41 = vld [vmem:[%s2343_s3 + $0x108] sm:$0xff] }
  0x2f   :  { %1694 = vmatmul.msk.f32.gmra.mxu1 %vm85_vm0, %v401_v32  ;;  %746 = vmatpush.msrb.mxu0 %v631_v2  ;;  %v1736_v32 = vld [vmem:[%s2343_s3 + $0xa0] sm:$0xff]  ;;  %v416_v43 = vld [vmem:[#allocation2 + $0x88] sm:$0xff] }
  0x30   :  { %845 = vmatpush.msrb.mxu1 %v1755_v5  ;;  %676 = vmatpush.msra.mxu3 %v1744_v16  ;;  %v415_v40 = vld [vmem:[#allocation2 + $0x80] sm:$0xff] }
  0x31   :  { %747 = vmatpush.msrb.mxu0 %v630_v6  ;;  %v2264_v47 = vld [vmem:[%s2342_s2] ss:$0 sm:$0xff] }
  0x32   :  { %846 = vmatpush.msrb.mxu1 %v1754_v9  ;;  %677 = vmatpush.msra.mxu3 %v1743_v17 }
  0x33   :  { %748 = vmatpush.msrb.mxu0 %v629_v12 }
  0x34   :  { %847 = vmatpush.msrb.mxu1 %v1753_v15  ;;  %678 = vmatpush.msra.mxu3 %v1742_v19 }
  0x35   :  { %1719 = vmatmul.msk.f32.gmra.mxu2 %vm85_vm0, %v404_v46  ;;  %749 = vmatpush.msrb.mxu0 %v628_v18 }
  0x36   :  { %1679 = vmatmul.msk.f32.gmra.mxu0 %vm85_vm0, %v403_v42  ;;  %679 = vmatpush.msra.mxu3 %v1741_v21 }
  0x37   :  { %1695 = vmatmul.msk.f32.gmra.mxu1 %vm85_vm0, %v402_v38  ;;  %750 = vmatpush.msrb.mxu0 %v627_v25  ;;  %v1750_v38 = vld [vmem:[%s2343_s3 + $0x110] sm:$0xff] }
  0x38   :  { %848 = vmatpush.msrb.mxu1 %v1752_v22  ;;  %680 = vmatpush.msra.mxu3 %v1740_v23 }
  0x39   :  { %751 = vmatpush.msrb.mxu0 %v626_v26 }
  0x3a   :  { %681 = vmatpush.msra.mxu3 %v1739_v24  ;;  %849 = vmatpush.msrb.mxu1 %v1751_v31 }
  0x3b   :  { %752 = vmatpush.msrb.mxu0 %v625_v30 }
  0x3c   :  { %682 = vmatpush.msra.mxu3 %v1738_v27  ;;  %850 = vmatpush.msrb.mxu1 %v1750_v38 }
  0x3d   :  { %1720 = vmatmul.msk.f32.gmra.mxu2 %vm85_vm0, %v405_v50  ;;  %753 = vmatpush.msrb.mxu0 %v624_v33 }
  0x3e   :  { %1680 = vmatmul.msk.f32.gmra.mxu0 %vm85_vm0, %v404_v46  ;;  %683 = vmatpush.msra.mxu3 %v1737_v29 }
  0x3f   :  { %1696 = vmatmul.msk.f32.gmra.mxu1 %vm85_vm0, %v403_v42  ;;  %v1748_v42 = vld [vmem:[%s2343_s3 + $0x100] sm:$0xff] }
  0x40   :  { %684 = vmatpush.msra.mxu3 %v1736_v32  ;;  %851 = vmatpush.msrb.mxu1 %v1749_v41 }
  0x42   :  { %685 = vmatpush.msra.mxu3 %v1735_v34  ;;  %852 = vmatpush.msrb.mxu1 %v1748_v42  ;;  %v986_v34 = vld [vmem:[#allocation4 + $0xf8] sm:$0xff] }
  0x43   :  { %987 = vmatpush.msrb.mxu2 %v986_v34  ;;  %v1079_v34 = vld [vmem:[#allocation4 + $0x1e8] sm:$0xff] }
  0x44   :  { %686 = vmatpush.msra.mxu3 %v1734_v35  ;;  %v969_v35 = vld [vmem:[#allocation4 + $0x78] sm:$0xff] }
  0x45   :  { %1721 = vmatmul.msk.f32.gmra.mxu2 %vm85_vm0, %v406_v54 }
  0x46   :  { %1681 = vmatmul.msk.f32.gmra.mxu0 %vm85_vm0, %v405_v50  ;;  %687 = vmatpush.msra.mxu3 %v1733_v37 }
  0x47   :  { %1697 = vmatmul.msk.f32.gmra.mxu1 %vm85_vm0, %v404_v46 }
  0x48   :  { %688 = vmatpush.msra.mxu3 %v1732_v39  ;;  %v967_v39 = vld [vmem:[#allocation4 + $0x68] sm:$0xff] }
  0x4a   :  { %1007 = vmatpush.msrb.mxu3 %v969_v35  ;;  %v972_v35 = vld [vmem:[#allocation4 + $0x88] sm:$0xff] }
  0x4d   :  { %1722 = vmatmul.msk.f32.gmra.mxu2 %vm85_vm0, %v407_v58 }
  0x4e   :  { %1682 = vmatmul.msk.f32.gmra.mxu0 %vm85_vm0, %v406_v54 }
  0x4f   :  { %1698 = vmatmul.msk.f32.gmra.mxu1 %vm85_vm0, %v405_v50 }
  0x55   :  { %1723 = vmatmul.msk.f32.gmra.mxu2 %vm85_vm0, %v408_v62 }
  0x56   :  { %1683 = vmatmul.msk.f32.gmra.mxu0 %vm85_vm0, %v407_v58 }
  0x57   :  { %1699 = vmatmul.msk.f32.gmra.mxu1 %vm85_vm0, %v406_v54 }
  0x5d   :  { %1724 = vmatmul.msk.f32.gmra.mxu2 %vm85_vm0, %v409_v3 }
  0x5e   :  { %1684 = vmatmul.msk.f32.gmra.mxu0 %vm85_vm0, %v408_v62 }
  0x5f   :  { %1700 = vmatmul.msk.f32.gmra.mxu1 %vm85_vm0, %v407_v58 }
  0x65   :  { %1725 = vmatmul.msk.f32.gmra.mxu2 %vm85_vm0, %v410_v7 }
  0x66   :  { %1685 = vmatmul.msk.f32.gmra.mxu0 %vm85_vm0, %v409_v3 }
  0x67   :  { %1701 = vmatmul.msk.f32.gmra.mxu1 %vm85_vm0, %v408_v62 }
  0x6d   :  { %1726 = vmatmul.msk.f32.gmra.mxu2 %vm85_vm0, %v411_v14 }
  0x6e   :  { %1686 = vmatmul.msk.f32.gmra.mxu0 %vm85_vm0, %v410_v7 }
  0x6f   :  { %1702 = vmatmul.msk.f32.gmra.mxu1 %vm85_vm0, %v409_v3 }
  0x75   :  { %1727 = vmatmul.msk.f32.gmra.mxu2 %vm85_vm0, %v412_v20 }
  0x76   :  { %1687 = vmatmul.msk.f32.gmra.mxu0 %vm85_vm0, %v411_v14 }
  0x77   :  { %1703 = vmatmul.msk.f32.gmra.mxu1 %vm85_vm0, %v410_v7 }
  0x7d   :  { %1728 = vmatmul.msk.f32.gmra.mxu2 %vm85_vm0, %v413_v28 }
  0x7e   :  { %1688 = vmatmul.msk.f32.gmra.mxu0 %vm85_vm0, %v412_v20 }
  0x7f   :  { %1704 = vmatmul.msk.f32.gmra.mxu1 %vm85_vm0, %v411_v14 }
  0x85   :  { %1729 = vmatmul.msk.f32.gmra.mxu2 %vm85_vm0, %v414_v36 }
  0x86   :  { %1689 = vmatmul.msk.f32.gmra.mxu0 %vm85_vm0, %v413_v28 }
  0x87   :  { %1705 = vmatmul.msk.f32.gmra.mxu1 %vm85_vm0, %v412_v20 }
  0x8d   :  { %1730 = vmatmul.msk.f32.gmra.mxu2 %vm85_vm0, %v415_v40 }
  0x8e   :  { %1690 = vmatmul.msk.f32.gmra.mxu0 %vm85_vm0, %v414_v36 }
  0x8f   :  { %1706 = vmatmul.msk.f32.gmra.mxu1 %vm85_vm0, %v413_v28 }
  0x95   :  { %1731 = vmatmul.msk.f32.gmra.mxu2 %vm85_vm0, %v416_v43  ;;  %v966_v43 = vld [vmem:[#allocation4 + $0x60] sm:$0xff] }
  0x96   :  { %1691 = vmatmul.msk.f32.gmra.mxu0 %vm85_vm0, %v415_v40 }
  0x97   :  { %1707 = vmatmul.msk.f32.gmra.mxu1 %vm85_vm0, %v414_v36  ;;  %v968_v36 = vld [vmem:[#allocation4 + $0x70] sm:$0xff] }
  0x98   :  { %1008 = vmatpush.msrb.mxu3 %v968_v36 }
  0x9a   :  { %1009 = vmatpush.msrb.mxu3 %v967_v39  ;;  %v1078_v39 = vld [vmem:[#allocation4 + $0x1e0] sm:$0xff] }
  0x9b   :  { %v239_v44 = vpop.f32.mrf.mxu0 }
  0x9c   :  { %v352_v45 = vpop.f32.mrf.mxu1  ;;  %1010 = vmatpush.msrb.mxu3 %v966_v43  ;;  %v1043_v43 = vld [vmem:[#allocation4 + $0x178] sm:$0xff] }
  0x9d   :  { %v353_v46 = vadd.f32 %v352_v45, %v239_v44 }
  0x9e   :  { %754 = vmatmul.f32.vlgmr.msrb.gmra.mxu0 %v1858_v0 }
  0xa0   :  { %v491_v48 = vpop.f32.mrf.mxu2 }
  0xa1   :  { %v539_v49 = vadd.f32 %v491_v48, %v353_v46  ;;  %v985_v46 = vld [vmem:[#allocation4 + $0xf0] sm:$0xff]  ;;  %v965_v48 = vld [vmem:[#allocation4 + $0x58] sm:$0xff] }
  0xa2   :  { %988 = vmatpush.msrb.mxu2 %v985_v46  ;;  %1011 = vmatpush.msrb.mxu3 %v965_v48  ;;  %v1042_v46 = vld [vmem:[#allocation4 + $0x170] sm:$0xff] }
  0xa3   :  { %v242_v50 = vpop.f32.mrf.mxu0  ;;  %v559_v52 = vadd.f32 %v2264_v47, %v539_v49  ;;  %v964_v49 = vld [vmem:[#allocation4 + $0x50] sm:$0xff] }
  0xa4   :  { %v355_v51 = vpop.f32.mrf.mxu1  ;;  %1012 = vmatpush.msrb.mxu3 %v964_v49  ;;  %v1076_v48 = vld [vmem:[#allocation4 + $0x1d0] sm:$0xff] }
  0xa5   :  { %v356_v53 = vadd.f32 %v355_v51, %v242_v50  ;;  %v575_v54 = vmax.f32 %v559_v52, 0.0  ;;  %v984_v52 = vld [vmem:[#allocation4 + $0xe8] sm:$0xff] }
  0xa6   :  { %989 = vmatpush.msrb.mxu2 %v984_v52 }
  0xa7   :  { %689 = vmatmul.f32.vlgmr.msra.gmra.mxu3 %v575_v54  ;;  %757 = vmatmul.f32.gmra.mxu0 %v575_v54 }
  0xa8   :  { %v494_v55 = vpop.f32.mrf.mxu2 }
  0xa9   :  { %v540_v56 = vadd.f32 %v494_v55, %v356_v53  ;;  %v963_v53 = vld [vmem:[#allocation4 + $0x48] sm:$0xff] }
  0xaa   :  { %1013 = vmatpush.msrb.mxu3 %v963_v53 }
  0xab   :  { %v560_v57 = vadd.f32 %v2264_v47, %v540_v56  ;;  %v245_v58 = vpop.f32.mrf.mxu0 }
  0xac   :  { %v358_v59 = vpop.f32.mrf.mxu1 }
  0xad   :  { %v576_v60 = vmax.f32 %v560_v57, 0.0  ;;  %v359_v61 = vadd.f32 %v358_v59, %v245_v58  ;;  %v983_v57 = vld [vmem:[#allocation4 + $0xe0] sm:$0xff] }
  0xae   :  { %v962_v58 = vld [vmem:[#allocation4 + $0x40] sm:$0xff]  ;;  %990 = vmatpush.msrb.mxu2 %v983_v57 }
  0xaf   :  { %692 = vmatmul.f32.gmra.mxu3 %v576_v60  ;;  %760 = vmatmul.f32.gmra.mxu0 %v576_v60  ;;  %v1040_v57 = vld [vmem:[#allocation4 + $0x160] sm:$0xff] }
  0xb0   :  { %853 = vmatmul.f32.vlgmr.msrb.gmra.mxu1 %v576_v60  ;;  %v497_v62 = vpop.f32.mrf.mxu2  ;;  %1014 = vmatpush.msrb.mxu3 %v962_v58  ;;  %v1074_v58 = vld [vmem:[#allocation4 + $0x1c0] sm:$0xff] }
  0xb1   :  { %v541_v63 = vadd.f32 %v497_v62, %v359_v61  ;;  %v982_v61 = vld [vmem:[#allocation4 + $0xd8] sm:$0xff] }
  0xb2   :  { %v961_v62 = vld [vmem:[#allocation4 + $0x38] sm:$0xff]  ;;  %991 = vmatpush.msrb.mxu2 %v982_v61 }
  0xb3   :  { %v561_v1 = vadd.f32 %v2264_v47, %v541_v63  ;;  %v248_v2 = vpop.f32.mrf.mxu0  ;;  %1015 = vmatpush.msrb.mxu3 %v961_v62  ;;  %v981_v63 = vld [vmem:[#allocation4 + $0xd0] sm:$0xff]  ;;  %v1073_v61 = vld [vmem:[#allocation4 + $0x1b8] sm:$0xff] }
  0xb4   :  { %v361_v3 = vpop.f32.mrf.mxu1  ;;  %992 = vmatpush.msrb.mxu2 %v981_v63  ;;  %v1038_v63 = vld [vmem:[#allocation4 + $0x150] sm:$0xff] }
  0xb5   :  { %v577_v4 = vmax.f32 %v561_v1, 0.0  ;;  %v362_v5 = vadd.f32 %v361_v3, %v248_v2  ;;  %v960_v1 = vld [vmem:[#allocation4 + $0x30] sm:$0xff] }
  0xb6   :  { %1016 = vmatpush.msrb.mxu3 %v960_v1  ;;  %v1072_v1 = vld [vmem:[#allocation4 + $0x1b0] sm:$0xff] }
  0xb7   :  { %695 = vmatmul.f32.gmra.mxu3 %v577_v4  ;;  %763 = vmatmul.f32.gmra.mxu0 %v577_v4 }
  0xb8   :  { %856 = vmatmul.f32.gmra.mxu1 %v577_v4  ;;  %v500_v6 = vpop.f32.mrf.mxu2  ;;  %v980_v4 = vld [vmem:[#allocation4 + $0xc8] sm:$0xff] }
  0xb9   :  { %v542_v7 = vadd.f32 %v500_v6, %v362_v5  ;;  %v959_v5 = vld [vmem:[#allocation4 + $0x28] sm:$0xff]  ;;  %993 = vmatpush.msrb.mxu2 %v980_v4 }
  0xba   :  { %1017 = vmatpush.msrb.mxu3 %v959_v5  ;;  %v1037_v5 = vld [vmem:[#allocation4 + $0x148] sm:$0xff] }
  0xbb   :  { %v562_v8 = vadd.f32 %v2264_v47, %v542_v7  ;;  %v251_v9 = vpop.f32.mrf.mxu0 }
  0xbc   :  { %v364_v10 = vpop.f32.mrf.mxu1 }
  0xbd   :  { %v578_v11 = vmax.f32 %v562_v8, 0.0  ;;  %v365_v12 = vadd.f32 %v364_v10, %v251_v9  ;;  %v979_v9 = vld [vmem:[#allocation4 + $0xc0] sm:$0xff] }
  0xbe   :  { %v958_v10 = vld [vmem:[#allocation4 + $0x20] sm:$0xff]  ;;  %994 = vmatpush.msrb.mxu2 %v979_v9 }
  0xbf   :  { %698 = vmatmul.f32.gmra.mxu3 %v578_v11  ;;  %766 = vmatmul.f32.gmra.mxu0 %v578_v11  ;;  %v1036_v9 = vld [vmem:[#allocation4 + $0x140] sm:$0xff] }
  0xc0   :  { %859 = vmatmul.f32.gmra.mxu1 %v578_v11  ;;  %v503_v13 = vpop.f32.mrf.mxu2  ;;  %1018 = vmatpush.msrb.mxu3 %v958_v10  ;;  %v1070_v10 = vld [vmem:[#allocation4 + $0x1a0] sm:$0xff] }
  0xc1   :  { %v543_v14 = vadd.f32 %v503_v13, %v365_v12  ;;  %v978_v13 = vld [vmem:[#allocation4 + $0xb8] sm:$0xff] }
  0xc2   :  { %995 = vmatpush.msrb.mxu2 %v978_v13 }
  0xc3   :  { %v563_v15 = vadd.f32 %v2264_v47, %v543_v14  ;;  %v254_v16 = vpop.f32.mrf.mxu0  ;;  %v957_v14 = vld [vmem:[#allocation4 + $0x18] sm:$0xff] }
  0xc4   :  { %v367_v17 = vpop.f32.mrf.mxu1  ;;  %1019 = vmatpush.msrb.mxu3 %v957_v14  ;;  %v1069_v14 = vld [vmem:[#allocation4 + $0x198] sm:$0xff] }
  0xc5   :  { %v579_v18 = vmax.f32 %v563_v15, 0.0  ;;  %v368_v19 = vadd.f32 %v367_v17, %v254_v16  ;;  %v977_v15 = vld [vmem:[#allocation4 + $0xb0] sm:$0xff] }
  0xc6   :  { %v956_v16 = vld [vmem:[#allocation4 + $0x10] sm:$0xff]  ;;  %996 = vmatpush.msrb.mxu2 %v977_v15 }
  0xc7   :  { %701 = vmatmul.f32.gmra.mxu3 %v579_v18  ;;  %769 = vmatmul.f32.gmra.mxu0 %v579_v18  ;;  %v1034_v15 = vld [vmem:[#allocation4 + $0x130] sm:$0xff] }
  0xc8   :  { %862 = vmatmul.f32.gmra.mxu1 %v579_v18  ;;  %v506_v20 = vpop.f32.mrf.mxu2  ;;  %1020 = vmatpush.msrb.mxu3 %v956_v16  ;;  %v1271_v16 = vld [vmem:[#allocation4 + $0x478] sm:$0xff] }
  0xc9   :  { %v544_v21 = vadd.f32 %v506_v20, %v368_v19  ;;  %v976_v19 = vld [vmem:[#allocation4 + $0xa8] sm:$0xff]  ;;  %1272 = vmatpush.msra.mxu0 %v1271_v16  ;;  %v1150_v16 = vld [vmem:[#allocation4 + $0x2c0] sm:$0xff] }
  0xca   :  { %v955_v20 = vld [vmem:[#allocation4 + $0x8] sm:$0xff]  ;;  %997 = vmatpush.msrb.mxu2 %v976_v19 }
  0xcb   :  { %v564_v22 = vadd.f32 %v2264_v47, %v544_v21  ;;  %v257_v23 = vpop.f32.mrf.mxu0  ;;  %1021 = vmatpush.msrb.mxu3 %v955_v20  ;;  %v1068_v20 = vld [vmem:[#allocation4 + $0x190] sm:$0xff] }
  0xcc   :  { %v370_v24 = vpop.f32.mrf.mxu1 }
  0xcd   :  { %v580_v25 = vmax.f32 %v564_v22, 0.0  ;;  %v371_v26 = vadd.f32 %v370_v24, %v257_v23  ;;  %v975_v24 = vld [vmem:[#allocation4 + $0xa0] sm:$0xff] }
  0xce   :  { %998 = vmatpush.msrb.mxu2 %v975_v24  ;;  %v1309_v24 = vld [vmem:[#allocation4 + $0x4f8] sm:$0xff] }
  0xcf   :  { %704 = vmatmul.f32.gmra.mxu3 %v580_v25  ;;  %772 = vmatmul.f32.gmra.mxu0 %v580_v25 }
  0xd0   :  { %865 = vmatmul.f32.gmra.mxu1 %v580_v25  ;;  %v509_v27 = vpop.f32.mrf.mxu2  ;;  %v954_v25 = vld [vmem:[#allocation4] sm:$0xff] }
  0xd1   :  { %v545_v28 = vadd.f32 %v509_v27, %v371_v26  ;;  %1022 = vmatpush.msrb.mxu3 %v954_v25  ;;  %v1067_v25 = vld [vmem:[#allocation4 + $0x188] sm:$0xff]  ;;  %1310 = vmatpush.msra.mxu1 %v1309_v24  ;;  %v1148_v24 = vld [vmem:[#allocation4 + $0x2b0] sm:$0xff] }
  0xd3   :  { %v565_v29 = vadd.f32 %v2264_v47, %v545_v28  ;;  %v260_v30 = vpop.f32.mrf.mxu0  ;;  %v1081_v28 = vld [vmem:[#allocation4 + $0x1f8] sm:$0xff] }
  0xd4   :  { %v373_v31 = vpop.f32.mrf.mxu1  ;;  %1082 = vmatpush.msra.mxu3 %v1081_v28  ;;  %v1066_v28 = vld [vmem:[#allocation4 + $0x180] sm:$0xff] }
  0xd5   :  { %v581_v32 = vmax.f32 %v565_v29, 0.0  ;;  %v374_v33 = vadd.f32 %v373_v31, %v260_v30  ;;  %v974_v29 = vld [vmem:[#allocation4 + $0x98] sm:$0xff]  ;;  %v1080_v30 = vld [vmem:[#allocation4 + $0x1f0] sm:$0xff] }
  0xd6   :  { %999 = vmatpush.msrb.mxu2 %v974_v29  ;;  %1083 = vmatpush.msra.mxu3 %v1080_v30  ;;  %v1031_v30 = vld [vmem:[#allocation4 + $0x118] sm:$0xff] }
  0xd7   :  { %707 = vmatmul.f32.gmra.mxu3 %v581_v32  ;;  %775 = vmatmul.f32.gmra.mxu0 %v581_v32 }
  0xd8   :  { %868 = vmatmul.f32.gmra.mxu1 %v581_v32  ;;  %v512_v37 = vpop.f32.mrf.mxu2  ;;  %v973_v32 = vld [vmem:[#allocation4 + $0x90] sm:$0xff]  ;;  %1084 = vmatpush.msra.mxu3 %v1079_v34 }
  0xd9   :  { %v546_v38 = vadd.f32 %v512_v37, %v374_v33  ;;  %1000 = vmatpush.msrb.mxu2 %v973_v32  ;;  %v1270_v34 = vld [vmem:[#allocation4 + $0x470] sm:$0xff] }
  0xda   :  { %1085 = vmatpush.msra.mxu3 %v1078_v39  ;;  %1273 = vmatpush.msra.mxu0 %v1270_v34  ;;  %v1269_v39 = vld [vmem:[#allocation4 + $0x468] sm:$0xff]  ;;  %v1112_v34 = vld [vmem:[#allocation4 + $0x240] sm:$0xff] }
  0xdb   :  { %v566_v40 = vadd.f32 %v2264_v47, %v546_v38  ;;  %v263_v41 = vpop.f32.mrf.mxu0  ;;  %1001 = vmatpush.msrb.mxu2 %v972_v35 }
  0xdc   :  { %v376_v42 = vpop.f32.mrf.mxu1  ;;  %1274 = vmatpush.msra.mxu0 %v1269_v39  ;;  %v1111_v39 = vld [vmem:[#allocation4 + $0x238] sm:$0xff] }
  0xdd   :  { %v582_v44 = vmax.f32 %v566_v40, 0.0  ;;  %v377_v45 = vadd.f32 %v376_v42, %v263_v41  ;;  %v971_v42 = vld [vmem:[#allocation4 + $0x80] sm:$0xff] }
  0xde   :  { %1002 = vmatpush.msrb.mxu2 %v971_v42 }
  0xdf   :  { %710 = vmatmul.f32.gmra.mxu3 %v582_v44  ;;  %778 = vmatmul.f32.gmra.mxu0 %v582_v44 }
  0xe0   :  { %871 = vmatmul.f32.gmra.mxu1 %v582_v44  ;;  %v515_v50 = vpop.f32.mrf.mxu2  ;;  %v1077_v44 = vld [vmem:[#allocation4 + $0x1d8] sm:$0xff]  ;;  %1044 = vmatpush.msra.mxu2 %v1043_v43  ;;  %v1268_v43 = vld [vmem:[#allocation4 + $0x460] sm:$0xff] }
  0xe1   :  { %v547_v51 = vadd.f32 %v515_v50, %v377_v45  ;;  %1086 = vmatpush.msra.mxu3 %v1077_v44  ;;  %v1041_v50 = vld [vmem:[#allocation4 + $0x168] sm:$0xff]  ;;  %1275 = vmatpush.msra.mxu0 %v1268_v43 }
  0xe2   :  { %1045 = vmatpush.msra.mxu2 %v1042_v46 }
  0xe3   :  { %v567_v54 = vadd.f32 %v2264_v47, %v547_v51  ;;  %v266_v55 = vpop.f32.mrf.mxu0  ;;  %v1075_v51 = vld [vmem:[#allocation4 + $0x1c8] sm:$0xff]  ;;  %1087 = vmatpush.msra.mxu3 %v1076_v48  ;;  %v1306_v48 = vld [vmem:[#allocation4 + $0x4e0] sm:$0xff] }
  0xe4   :  { %v379_v56 = vpop.f32.mrf.mxu1  ;;  %1046 = vmatpush.msra.mxu2 %v1041_v50 }
  0xe5   :  { %v583_v59 = vmax.f32 %v567_v54, 0.0  ;;  %v380_v60 = vadd.f32 %v379_v56, %v266_v55  ;;  %1088 = vmatpush.msra.mxu3 %v1075_v51 }
  0xe6   :  { %1047 = vmatpush.msra.mxu2 %v1040_v57 }
  0xe7   :  { %713 = vmatmul.f32.gmra.mxu3 %v583_v59  ;;  %781 = vmatmul.f32.gmra.mxu0 %v583_v59 }
  0xe8   :  { %874 = vmatmul.f32.gmra.mxu1 %v583_v59  ;;  %v518_v2 = vpop.f32.mrf.mxu2  ;;  %v1039_v59 = vld [vmem:[#allocation4 + $0x158] sm:$0xff]  ;;  %1089 = vmatpush.msra.mxu3 %v1074_v58 }
  0xe9   :  { %v548_v3 = vadd.f32 %v518_v2, %v380_v60  ;;  %1048 = vmatpush.msra.mxu2 %v1039_v59  ;;  %v1305_v58 = vld [vmem:[#allocation4 + $0x4d8] sm:$0xff] }
  0xea   :  { %1090 = vmatpush.msra.mxu3 %v1073_v61 }
  0xeb   :  { %v568_v6 = vadd.f32 %v2264_v47, %v548_v3  ;;  %v269_v7 = vpop.f32.mrf.mxu0  ;;  %1049 = vmatpush.msra.mxu2 %v1038_v63 }
  0xec   :  { %v382_v8 = vpop.f32.mrf.mxu1  ;;  %1091 = vmatpush.msra.mxu3 %v1072_v1 }
  0xed   :  { %v584_v11 = vmax.f32 %v568_v6, 0.0  ;;  %v383_v12 = vadd.f32 %v382_v8, %v269_v7  ;;  %v1071_v8 = vld [vmem:[#allocation4 + $0x1a8] sm:$0xff]  ;;  %1050 = vmatpush.msra.mxu2 %v1037_v5  ;;  %v1266_v5 = vld [vmem:[#allocation4 + $0x450] sm:$0xff] }
  0xee   :  { %1092 = vmatpush.msra.mxu3 %v1071_v8 }
  0xef   :  { %716 = vmatmul.f32.gmra.mxu3 %v584_v11  ;;  %784 = vmatmul.f32.gmra.mxu0 %v584_v11 }
  0xf0   :  { %877 = vmatmul.f32.gmra.mxu1 %v584_v11  ;;  %v521_v17 = vpop.f32.mrf.mxu2  ;;  %1051 = vmatpush.msra.mxu2 %v1036_v9 }
  0xf1   :  { %v549_v18 = vadd.f32 %v521_v17, %v383_v12  ;;  %v1035_v12 = vld [vmem:[#allocation4 + $0x138] sm:$0xff]  ;;  %1093 = vmatpush.msra.mxu3 %v1070_v10  ;;  %v1304_v10 = vld [vmem:[#allocation4 + $0x4d0] sm:$0xff] }
  0xf2   :  { %1052 = vmatpush.msra.mxu2 %v1035_v12  ;;  %v1117_v12 = vld [vmem:[#allocation4 + $0x268] sm:$0xff] }
  0xf3   :  { %v569_v21 = vadd.f32 %v2264_v47, %v549_v18  ;;  %v272_v22 = vpop.f32.mrf.mxu0  ;;  %1094 = vmatpush.msra.mxu3 %v1069_v14 }
  0xf4   :  { %v385_v23 = vpop.f32.mrf.mxu1  ;;  %1053 = vmatpush.msra.mxu2 %v1034_v15  ;;  %v1116_v15 = vld [vmem:[#allocation4 + $0x260] sm:$0xff] }
  0xf5   :  { %v585_v26 = vmax.f32 %v569_v21, 0.0  ;;  %v386_v27 = vadd.f32 %v385_v23, %v272_v22  ;;  %v1033_v23 = vld [vmem:[#allocation4 + $0x128] sm:$0xff]  ;;  %1095 = vmatpush.msra.mxu3 %v1068_v20  ;;  %v1149_v20 = vld [vmem:[#allocation4 + $0x2b8] sm:$0xff] }
  0xf6   :  { %1054 = vmatpush.msra.mxu2 %v1033_v23  ;;  %v1114_v23 = vld [vmem:[#allocation4 + $0x250] sm:$0xff] }
  0xf7   :  { %719 = vmatmul.f32.gmra.mxu3 %v585_v26  ;;  %787 = vmatmul.f32.gmra.mxu0 %v585_v26 }
  0xf8   :  { %880 = vmatmul.f32.gmra.mxu1 %v585_v26  ;;  %v524_v31 = vpop.f32.mrf.mxu2  ;;  %v1032_v26 = vld [vmem:[#allocation4 + $0x120] sm:$0xff]  ;;  %1096 = vmatpush.msra.mxu3 %v1067_v25 }
  0xf9   :  { %v550_v33 = vadd.f32 %v524_v31, %v386_v27  ;;  %1055 = vmatpush.msra.mxu2 %v1032_v26  ;;  %v1264_v26 = vld [vmem:[#allocation4 + $0x440] sm:$0xff] }
  0xfa   :  { %1097 = vmatpush.msra.mxu3 %v1066_v28  ;;  %v1303_v28 = vld [vmem:[#allocation4 + $0x4c8] sm:$0xff] }
  0xfb   :  { %v570_v36 = vadd.f32 %v2264_v47, %v550_v33  ;;  %v275_v37 = vpop.f32.mrf.mxu0  ;;  %v1030_v33 = vld [vmem:[#allocation4 + $0x110] sm:$0xff]  ;;  %1056 = vmatpush.msra.mxu2 %v1031_v30  ;;  %v1113_v30 = vld [vmem:[#allocation4 + $0x248] sm:$0xff] }
  0xfc   :  { %v388_v38 = vpop.f32.mrf.mxu1 }
  0xfd   :  { %v586_v40 = vmax.f32 %v570_v36, 0.0  ;;  %v389_v41 = vadd.f32 %v388_v38, %v275_v37  ;;  %v1029_v36 = vld [vmem:[#allocation4 + $0x108] sm:$0xff]  ;;  %v1308_v37 = vld [vmem:[#allocation4 + $0x4f0] sm:$0xff]  ;;  %1057 = vmatpush.msra.mxu2 %v1030_v33  ;;  %v1028_v38 = vld [vmem:[#allocation4 + $0x100] sm:$0xff] }
  0xfe   :  { %1311 = vmatpush.msra.mxu1 %v1308_v37 }
  0xff   :  { %722 = vmatmul.f32.gmra.mxu3 %v586_v40  ;;  %790 = vmatmul.f32.gmra.mxu0 %v586_v40 }
 0x100   :  { %883 = vmatmul.f32.gmra.mxu1 %v586_v40  ;;  %v527_v45 = vpop.f32.mrf.mxu2  ;;  %1058 = vmatpush.msra.mxu2 %v1029_v36  ;;  %v1262_v36 = vld [vmem:[#allocation4 + $0x430] sm:$0xff] }
 0x101   :  { %v551_v49 = vadd.f32 %v527_v45, %v389_v41  ;;  %v1307_v41 = vld [vmem:[#allocation4 + $0x4e8] sm:$0xff]  ;;  %v2286_v45 = vld [vmem:[%s2344_s4] ss:$0 sm:$0xff] }
 0x102   :  { %1059 = vmatpush.msra.mxu2 %v1028_v38  ;;  %1312 = vmatpush.msra.mxu1 %v1307_v41  ;;  %v1261_v41 = vld [vmem:[#allocation4 + $0x428] sm:$0xff] }
 0x103   :  { %v571_v52 = vadd.f32 %v2264_v47, %v551_v49  ;;  %v278_v53 = vpop.f32.mrf.mxu0 }
 0x104   :  { %v391_v54 = vpop.f32.mrf.mxu1  ;;  %1313 = vmatpush.msra.mxu1 %v1306_v48 }
 0x105   :  { %v587_v55 = vmax.f32 %v571_v52, 0.0  ;;  %v392_v56 = vadd.f32 %v391_v54, %v278_v53  ;;  %v1157_v53 = vld [vmem:[#allocation4 + $0x2f8] sm:$0xff] }
 0x106   :  { %v1267_v54 = vld [vmem:[#allocation4 + $0x458] sm:$0xff]  ;;  %1314 = vmatpush.msra.mxu1 %v1305_v58 }
 0x107   :  { %725 = vmatmul.f32.gmra.mxu3 %v587_v55  ;;  %793 = vmatmul.f32.gmra.mxu0 %v587_v55 }
 0x108   :  { %886 = vmatmul.f32.gmra.mxu1 %v587_v55  ;;  %v530_v60 = vpop.f32.mrf.mxu2  ;;  %1276 = vmatpush.msra.mxu0 %v1267_v54  ;;  %v1142_v54 = vld [vmem:[#allocation4 + $0x280] sm:$0xff] }
 0x109   :  { %v552_v62 = vadd.f32 %v530_v60, %v392_v56  ;;  %v1156_v56 = vld [vmem:[#allocation4 + $0x2f0] sm:$0xff]  ;;  %v1155_v60 = vld [vmem:[#allocation4 + $0x2e8] sm:$0xff]  ;;  %1315 = vmatpush.msra.mxu1 %v1304_v10 }
 0x10a   :  { %1277 = vmatpush.msra.mxu0 %v1266_v5  ;;  %v1298_v5 = vld [vmem:[#allocation4 + $0x4a0] sm:$0xff]  ;;  %v1105_v10 = vld [vmem:[#allocation4 + $0x208] sm:$0xff] }
 0x10b   :  { %v572_v2 = vadd.f32 %v2264_v47, %v552_v62  ;;  %v281_v3 = vpop.f32.mrf.mxu0  ;;  %v1154_v62 = vld [vmem:[#allocation4 + $0x2e0] sm:$0xff]  ;;  %1316 = vmatpush.msra.mxu1 %v1303_v28  ;;  %v1227_v28 = vld [vmem:[#allocation4 + $0x3c8] sm:$0xff] }
 0x10c   :  { %v394_v4 = vpop.f32.mrf.mxu1 }
 0x10d   :  { %v588_v6 = vmax.f32 %v572_v2, 0.0  ;;  %v395_v7 = vadd.f32 %v394_v4, %v281_v3  ;;  %v1119_v2 = vld [vmem:[#allocation4 + $0x278] sm:$0xff] }
 0x10e   :  { %v1153_v3 = vld [vmem:[#allocation4 + $0x2d8] sm:$0xff] }
 0x10f   :  { %728 = vmatmul.f32.gmra.mxu3 %v588_v6  ;;  %796 = vmatmul.f32.gmra.mxu0 %v588_v6 }
 0x110   :  { %889 = vmatmul.f32.gmra.mxu1 %v588_v6  ;;  %v533_v11 = vpop.f32.mrf.mxu2  ;;  %v1118_v6 = vld [vmem:[#allocation4 + $0x270] sm:$0xff] }
 0x111   :  { %v553_v13 = vadd.f32 %v533_v11, %v395_v7  ;;  %v1152_v7 = vld [vmem:[#allocation4 + $0x2d0] sm:$0xff] }
 0x113   :  { %v573_v17 = vadd.f32 %v2264_v47, %v553_v13  ;;  %v284_v18 = vpop.f32.mrf.mxu0  ;;  %v1151_v13 = vld [vmem:[#allocation4 + $0x2c8] sm:$0xff] }
 0x114   :  { %v397_v19 = vpop.f32.mrf.mxu1 }
 0x115   :  { %v589_v21 = vmax.f32 %v573_v17, 0.0  ;;  %v398_v22 = vadd.f32 %v397_v19, %v284_v18  ;;  %v1115_v19 = vld [vmem:[#allocation4 + $0x258] sm:$0xff] }
 0x117   :  { %731 = vmatmul.f32.gmra.mxu3 %v589_v21  ;;  %799 = vmatmul.f32.gmra.mxu0 %v589_v21 }
 0x118   :  { %892 = vmatmul.f32.gmra.mxu1 %v589_v21  ;;  %v536_v27 = vpop.f32.mrf.mxu2  ;;  %v1265_v21 = vld [vmem:[#allocation4 + $0x448] sm:$0xff] }
 0x119   :  { %v554_v29 = vadd.f32 %v536_v27, %v398_v22  ;;  %1278 = vmatpush.msra.mxu0 %v1265_v21 }
 0x11b   :  { %v755_v31 = vpop.f32.mrf.mxu0  ;;  %v574_v32 = vadd.f32 %v2264_v47, %v554_v29  ;;  %1279 = vmatpush.msra.mxu0 %v1264_v26  ;;  %v1421_v26 = vld [vmem:[#allocation4 + $0x668] sm:$0xff] }
 0x11d   :  { %v590_v35 = vmax.f32 %v574_v32, 0.0  ;;  %v1263_v32 = vld [vmem:[#allocation4 + $0x438] sm:$0xff] }
 0x11e   :  { %1280 = vmatpush.msra.mxu0 %v1263_v32  ;;  %v1420_v32 = vld [vmem:[#allocation4 + $0x660] sm:$0xff] }
 0x11f   :  { %734 = vmatmul.f32.gmra.mxu3 %v590_v35 }
 0x120   :  { %895 = vmatmul.f32.gmra.mxu1 %v590_v35  ;;  %v1146_v35 = vld [vmem:[#allocation4 + $0x2a0] sm:$0xff]  ;;  %1281 = vmatpush.msra.mxu0 %v1262_v36  ;;  %v1419_v36 = vld [vmem:[#allocation4 + $0x658] sm:$0xff] }
 0x122   :  { %1282 = vmatpush.msra.mxu0 %v1261_v41  ;;  %v1418_v41 = vld [vmem:[#allocation4 + $0x650] sm:$0xff] }
 0x124   :  { %v758_v40 = vpop.f32.mrf.mxu0 }
 0x128   :  { %898 = vmatmul.f32.gmra.mxu1 %v1858_v0 }
 0x12a   :  { %v690_v47 = vpop.f32.mrf.mxu3 }
 0x12b   :  { %v756_v42 = vadd.f32 %v755_v31, %v690_v47  ;;  %v1147_v31 = vld [vmem:[#allocation4 + $0x2a8] sm:$0xff]  ;;  %v1110_v47 = vld [vmem:[#allocation4 + $0x230] sm:$0xff] }
 0x12c   :  { %v761_v44 = vpop.f32.mrf.mxu0 }
 0x12d   :  { %v854_v46 = vpop.f32.mrf.mxu1 }
 0x12e   :  { %v902_v49 = vadd.f32 %v854_v46, %v756_v42  ;;  %v1144_v42 = vld [vmem:[#allocation4 + $0x290] sm:$0xff]  ;;  %v1302_v46 = vld [vmem:[#allocation4 + $0x4c0] sm:$0xff] }
 0x12f   :  { %1317 = vmatpush.msra.mxu1 %v1302_v46  ;;  %v1417_v46 = vld [vmem:[#allocation4 + $0x648] sm:$0xff] }
 0x130   :  { %v922_v50 = vadd.f32 %v2286_v45, %v902_v49 }
 0x132   :  { %v938_v51 = vmax.f32 %v922_v50, 0.0  ;;  %v693_v52 = vpop.f32.mrf.mxu3  ;;  %v1109_v50 = vld [vmem:[#allocation4 + $0x228] sm:$0xff] }
 0x133   :  { %v759_v0 = vadd.f32 %v758_v40, %v693_v52  ;;  %v1145_v40 = vld [vmem:[#allocation4 + $0x298] sm:$0xff] }
 0x134   :  { %1023 = vmatmul.f32.vlgmr.msrb.gmra.mxu3 %v938_v51  ;;  %v764_v55 = vpop.f32.mrf.mxu0  ;;  %v1143_v51 = vld [vmem:[#allocation4 + $0x288] sm:$0xff]  ;;  %v1259_v52 = vld [vmem:[#allocation4 + $0x418] sm:$0xff] }
 0x135   :  { %1158 = vmatpush.msrb.mxu3 %v1157_v53  ;;  %v857_v57 = vpop.f32.mrf.mxu1  ;;  %v1301_v53 = vld [vmem:[#allocation4 + $0x4b8] sm:$0xff] }
 0x136   :  { %v903_v59 = vadd.f32 %v857_v57, %v759_v0  ;;  %v1108_v0 = vld [vmem:[#allocation4 + $0x220] sm:$0xff]  ;;  %1318 = vmatpush.msra.mxu1 %v1301_v53  ;;  %v1300_v57 = vld [vmem:[#allocation4 + $0x4b0] sm:$0xff] }
 0x137   :  { %1159 = vmatpush.msrb.mxu3 %v1156_v56  ;;  %v1233_v56 = vld [vmem:[#allocation4 + $0x3f8] sm:$0xff]  ;;  %v1416_v53 = vld [vmem:[#allocation4 + $0x640] sm:$0xff] }
 0x138   :  { %v923_v61 = vadd.f32 %v2286_v45, %v903_v59  ;;  %1319 = vmatpush.msra.mxu1 %v1300_v57  ;;  %v1415_v57 = vld [vmem:[#allocation4 + $0x638] sm:$0xff] }
 0x139   :  { %1160 = vmatpush.msrb.mxu3 %v1155_v60  ;;  %v1107_v60 = vld [vmem:[#allocation4 + $0x218] sm:$0xff] }
 0x13a   :  { %v939_v63 = vmax.f32 %v923_v61, 0.0  ;;  %v696_v1 = vpop.f32.mrf.mxu3  ;;  %v1257_v61 = vld [vmem:[#allocation4 + $0x408] sm:$0xff] }
 0x13b   :  { %1161 = vmatpush.msrb.mxu3 %v1154_v62  ;;  %v762_v4 = vadd.f32 %v761_v44, %v696_v1  ;;  %v1260_v44 = vld [vmem:[#allocation4 + $0x420] sm:$0xff]  ;;  %v1299_v1 = vld [vmem:[#allocation4 + $0x4a8] sm:$0xff] }
 0x13c   :  { %1003 = vmatmul.f32.vlgmr.msrb.gmra.mxu2 %v939_v63  ;;  %v2290_v8 = vpop.f32.mrf.mxu0  ;;  %1283 = vmatpush.msra.mxu0 %v1260_v44  ;;  %v1232_v63 = vld [vmem:[#allocation4 + $0x3f0] sm:$0xff] }
 0x13d   :  { %1120 = vmatpush.msrb.mxu2 %v1119_v2  ;;  %1162 = vmatpush.msrb.mxu3 %v1153_v3  ;;  %v860_v9 = vpop.f32.mrf.mxu1  ;;  %v1106_v2 = vld [vmem:[#allocation4 + $0x210] sm:$0xff] }
 0x13e   :  { %v904_v11 = vadd.f32 %v860_v9, %v762_v4  ;;  %1284 = vmatpush.msra.mxu0 %v1259_v52  ;;  %v1256_v4 = vld [vmem:[#allocation4 + $0x400] sm:$0xff]  ;;  %1320 = vmatpush.msra.mxu1 %v1299_v1  ;;  %v1190_v44 = vld [vmem:[#allocation4 + $0x350] sm:$0xff]  ;;  %v1189_v52 = vld [vmem:[#allocation4 + $0x348] sm:$0xff] }
 0x13f   :  { %1121 = vmatpush.msrb.mxu2 %v1118_v6  ;;  %1163 = vmatpush.msrb.mxu3 %v1152_v7  ;;  %v1231_v7 = vld [vmem:[#allocation4 + $0x3e8] sm:$0xff] }
 0x140   :  { %v924_v14 = vadd.f32 %v2286_v45, %v904_v11  ;;  %v1297_v11 = vld [vmem:[#allocation4 + $0x498] sm:$0xff]  ;;  %1321 = vmatpush.msra.mxu1 %v1298_v5  ;;  %v1413_v5 = vld [vmem:[#allocation4 + $0x628] sm:$0xff] }
 0x141   :  { %1122 = vmatpush.msrb.mxu2 %v1117_v12  ;;  %1164 = vmatpush.msrb.mxu3 %v1151_v13  ;;  %v1423_v12 = vld [vmem:[#allocation4 + $0x678] sm:$0xff]  ;;  %v1230_v13 = vld [vmem:[#allocation4 + $0x3e0] sm:$0xff] }
 0x142   :  { %v940_v17 = vmax.f32 %v924_v14, 0.0  ;;  %v699_v18 = vpop.f32.mrf.mxu3  ;;  %1322 = vmatpush.msra.mxu1 %v1297_v11 }
 0x143   :  { %1123 = vmatpush.msrb.mxu2 %v1116_v15  ;;  %1165 = vmatpush.msrb.mxu3 %v1150_v16  ;;  %v765_v22 = vadd.f32 %v764_v55, %v699_v18  ;;  %v1258_v55 = vld [vmem:[#allocation4 + $0x410] sm:$0xff]  ;;  %v1104_v15 = vld [vmem:[#allocation4 + $0x200] sm:$0xff]  ;;  %v1229_v18 = vld [vmem:[#allocation4 + $0x3d8] sm:$0xff] }
 0x144   :  { %1060 = vmatmul.f32.vlgmr.msra.gmra.mxu2 %v940_v17  ;;  %v2293_v25 = vpop.f32.mrf.mxu0  ;;  %1285 = vmatpush.msra.mxu0 %v1258_v55  ;;  %v1296_v16 = vld [vmem:[#allocation4 + $0x490] sm:$0xff]  ;;  %v1188_v55 = vld [vmem:[#allocation4 + $0x340] sm:$0xff] }
 0x145   :  { %1124 = vmatpush.msrb.mxu2 %v1115_v19  ;;  %1166 = vmatpush.msrb.mxu3 %v1149_v20  ;;  %v863_v27 = vpop.f32.mrf.mxu1  ;;  %v1422_v17 = vld [vmem:[#allocation4 + $0x670] sm:$0xff] }
 0x146   :  { %v905_v29 = vadd.f32 %v863_v27, %v765_v22  ;;  %1286 = vmatpush.msra.mxu0 %v1257_v61  ;;  %v1195_v22 = vld [vmem:[#allocation4 + $0x378] sm:$0xff]  ;;  %1323 = vmatpush.msra.mxu1 %v1296_v16 }
 0x147   :  { %1125 = vmatpush.msrb.mxu2 %v1114_v23  ;;  %1167 = vmatpush.msrb.mxu3 %v1148_v24  ;;  %v1228_v23 = vld [vmem:[#allocation4 + $0x3d0] sm:$0xff]  ;;  %v1295_v24 = vld [vmem:[#allocation4 + $0x488] sm:$0xff] }
 0x148   :  { %v925_v33 = vadd.f32 %v2286_v45, %v905_v29  ;;  %1287 = vmatpush.msra.mxu0 %v1256_v4  ;;  %v1294_v29 = vld [vmem:[#allocation4 + $0x480] sm:$0xff]  ;;  %1324 = vmatpush.msra.mxu1 %v1295_v24  ;;  %v1186_v4 = vld [vmem:[#allocation4 + $0x330] sm:$0xff]  ;;  %v1411_v24 = vld [vmem:[#allocation4 + $0x618] sm:$0xff] }
 0x149   :  { %1126 = vmatpush.msrb.mxu2 %v1113_v30  ;;  %1168 = vmatpush.msrb.mxu3 %v1147_v31  ;;  %v1193_v30 = vld [vmem:[#allocation4 + $0x368] sm:$0xff] }
 0x14a   :  { %v941_v37 = vmax.f32 %v925_v33, 0.0  ;;  %v702_v38 = vpop.f32.mrf.mxu3  ;;  %1424 = vmatpush.msrb.mxu0 %v1423_v12  ;;  %v1226_v33 = vld [vmem:[#allocation4 + $0x3c0] sm:$0xff]  ;;  %1325 = vmatpush.msra.mxu1 %v1294_v29  ;;  %v1185_v12 = vld [vmem:[#allocation4 + $0x328] sm:$0xff]  ;;  %v1182_v29 = vld [vmem:[#allocation4 + $0x310] sm:$0xff] }
 0x14b   :  { %1127 = vmatpush.msrb.mxu2 %v1112_v34  ;;  %1169 = vmatpush.msrb.mxu3 %v1146_v35  ;;  %v768_v49 = vadd.f32 %v2290_v8, %v702_v38  ;;  %v1461_v34 = vld [vmem:[#allocation4 + $0x6f8] sm:$0xff]  ;;  %v1192_v35 = vld [vmem:[#allocation4 + $0x360] sm:$0xff]  ;;  %v1460_v38 = vld [vmem:[#allocation4 + $0x6f0] sm:$0xff] }
 0x14c   :  { %1098 = vmatmul.f32.vlgmr.msra.gmra.mxu3 %v941_v37  ;;  %v2296_v43 = vpop.f32.mrf.mxu0  ;;  %1425 = vmatpush.msrb.mxu0 %v1422_v17  ;;  %v1225_v37 = vld [vmem:[#allocation4 + $0x3b8] sm:$0xff]  ;;  %v1184_v17 = vld [vmem:[#allocation4 + $0x320] sm:$0xff] }
 0x14d   :  { %1128 = vmatpush.msrb.mxu2 %v1111_v39  ;;  %1170 = vmatpush.msrb.mxu3 %v1145_v40  ;;  %v866_v48 = vpop.f32.mrf.mxu1  ;;  %v1191_v40 = vld [vmem:[#allocation4 + $0x358] sm:$0xff] }
 0x14e   :  { %v906_v58 = vadd.f32 %v866_v48, %v768_v49  ;;  %1426 = vmatpush.msrb.mxu0 %v1421_v26  ;;  %1462 = vmatpush.msrb.mxu1 %v1461_v34  ;;  %v1384_v26 = vld [vmem:[#allocation4 + $0x5f0] sm:$0xff] }
 0x14f   :  { %1129 = vmatpush.msrb.mxu2 %v1110_v47  ;;  %1171 = vmatpush.msrb.mxu3 %v1144_v42  ;;  %v1224_v47 = vld [vmem:[#allocation4 + $0x3b0] sm:$0xff]  ;;  %v1459_v42 = vld [vmem:[#allocation4 + $0x6e8] sm:$0xff] }
 0x150   :  { %v926_v8 = vadd.f32 %v2286_v45, %v906_v58  ;;  %1427 = vmatpush.msrb.mxu0 %v1420_v32  ;;  %1463 = vmatpush.msrb.mxu1 %v1460_v38  ;;  %v1451_v32 = vld [vmem:[#allocation4 + $0x6a8] sm:$0xff]  ;;  %v1450_v38 = vld [vmem:[#allocation4 + $0x6a0] sm:$0xff] }
 0x151   :  { %1130 = vmatpush.msrb.mxu2 %v1109_v50  ;;  %1172 = vmatpush.msrb.mxu3 %v1143_v51  ;;  %v1223_v50 = vld [vmem:[#allocation4 + $0x3a8] sm:$0xff]  ;;  %v1458_v51 = vld [vmem:[#allocation4 + $0x6e0] sm:$0xff] }
 0x152   :  { %v705_v59 = vpop.f32.mrf.mxu3  ;;  %v942_v19 = vmax.f32 %v926_v8, 0.0  ;;  %1428 = vmatpush.msrb.mxu0 %v1419_v36  ;;  %1464 = vmatpush.msrb.mxu1 %v1459_v42  ;;  %v1219_v8 = vld [vmem:[#allocation4 + $0x388] sm:$0xff] }
 0x153   :  { %1131 = vmatpush.msrb.mxu2 %v1108_v0  ;;  %1173 = vmatpush.msrb.mxu3 %v1142_v54  ;;  %v771_v62 = vadd.f32 %v2293_v25, %v705_v59  ;;  %v1194_v25 = vld [vmem:[#allocation4 + $0x370] sm:$0xff]  ;;  %v1222_v0 = vld [vmem:[#allocation4 + $0x3a0] sm:$0xff]  ;;  %v1457_v54 = vld [vmem:[#allocation4 + $0x6d8] sm:$0xff] }
 0x154   :  { %v2300_v3 = vpop.f32.mrf.mxu0  ;;  %1429 = vmatpush.msrb.mxu0 %v1418_v41  ;;  %1465 = vmatpush.msrb.mxu1 %v1458_v51  ;;  %v1221_v59 = vld [vmem:[#allocation4 + $0x398] sm:$0xff]  ;;  %v1409_v36 = vld [vmem:[#allocation4 + $0x608] sm:$0xff]  ;;  %v1408_v41 = vld [vmem:[#allocation4 + $0x600] sm:$0xff] }
 0x155   :  { %1234 = vmatpush.msra.mxu3 %v1233_v56  ;;  %1132 = vmatpush.msrb.mxu2 %v1107_v60  ;;  %v869_v6 = vpop.f32.mrf.mxu1  ;;  %v1456_v60 = vld [vmem:[#allocation4 + $0x6d0] sm:$0xff] }
 0x156   :  { %v907_v9 = vadd.f32 %v869_v6, %v771_v62  ;;  %1430 = vmatpush.msrb.mxu0 %v1417_v46  ;;  %v1187_v62 = vld [vmem:[#allocation4 + $0x338] sm:$0xff]  ;;  %1466 = vmatpush.msrb.mxu1 %v1457_v54  ;;  %v1346_v51 = vld [vmem:[#allocation4 + $0x570] sm:$0xff] }
 0x157   :  { %1235 = vmatpush.msra.mxu3 %v1232_v63  ;;  %1133 = vmatpush.msrb.mxu2 %v1106_v2  ;;  %v1414_v63 = vld [vmem:[#allocation4 + $0x630] sm:$0xff]  ;;  %v1347_v46 = vld [vmem:[#allocation4 + $0x578] sm:$0xff] }
 0x158   :  { %v927_v14 = vadd.f32 %v2286_v45, %v907_v9  ;;  %1431 = vmatpush.msrb.mxu0 %v1416_v53  ;;  %v1220_v2 = vld [vmem:[#allocation4 + $0x390] sm:$0xff]  ;;  %1467 = vmatpush.msrb.mxu1 %v1456_v60  ;;  %v1454_v9 = vld [vmem:[#allocation4 + $0x6c0] sm:$0xff] }
 0x159   :  { %1236 = vmatpush.msra.mxu3 %v1231_v7  ;;  %1134 = vmatpush.msrb.mxu2 %v1105_v10  ;;  %v1448_v54 = vld [vmem:[#allocation4 + $0x690] sm:$0xff]  ;;  %v1446_v60 = vld [vmem:[#allocation4 + $0x680] sm:$0xff] }
 0x15a   :  { %v943_v20 = vmax.f32 %v927_v14, 0.0  ;;  %v2304_v21 = vpop.f32.mrf.mxu3  ;;  %1432 = vmatpush.msrb.mxu0 %v1415_v57  ;;  %v1218_v14 = vld [vmem:[#allocation4 + $0x380] sm:$0xff]  ;;  %v1447_v57 = vld [vmem:[#allocation4 + $0x688] sm:$0xff] }
 0x15b   :  { %1237 = vmatpush.msra.mxu3 %v1230_v13  ;;  %1135 = vmatpush.msrb.mxu2 %v1104_v15  ;;  %v774_v10 = vadd.f32 %v2296_v43, %v2304_v21  ;;  %v1412_v13 = vld [vmem:[#allocation4 + $0x620] sm:$0xff]  ;;  %v1453_v15 = vld [vmem:[#allocation4 + $0x6b8] sm:$0xff] }
 0x15c   :  { %1136 = vmatmul.f32.vlgmr.msrb.gmra.mxu2 %v942_v19  ;;  %1174 = vmatmul.f32.vlgmr.msrb.gmra.mxu3 %v943_v20  ;;  %v779_v31 = vpop.f32.mrf.mxu0  ;;  %v1385_v19 = vld [vmem:[#allocation4 + $0x5f8] sm:$0xff] }
 0x15d   :  { %1238 = vmatpush.msra.mxu3 %v1229_v18  ;;  %1196 = vmatpush.msra.mxu2 %v1195_v22  ;;  %v2306_v27 = vpop.f32.mrf.mxu1  ;;  %v1183_v22 = vld [vmem:[#allocation4 + $0x318] sm:$0xff] }
 0x15e   :  { %1433 = vmatpush.msrb.mxu0 %v1414_v63  ;;  %v908_v43 = vadd.f32 %v2306_v27, %v774_v10  ;;  %v1383_v27 = vld [vmem:[#allocation4 + $0x5e8] sm:$0xff]  ;;  %v1376_v63 = vld [vmem:[#allocation4 + $0x5b0] sm:$0xff]  ;;  %v1373_v10 = vld [vmem:[#allocation4 + $0x598] sm:$0xff] }
 0x15f   :  { %1239 = vmatpush.msra.mxu3 %v1228_v23  ;;  %1197 = vmatpush.msra.mxu2 %v1194_v25 }
 0x160   :  { %1434 = vmatpush.msrb.mxu0 %v1413_v5  ;;  %v1341_v5 = vld [vmem:[#allocation4 + $0x548] sm:$0xff] }
 0x161   :  { %1240 = vmatpush.msra.mxu3 %v1227_v28  ;;  %1198 = vmatpush.msra.mxu2 %v1193_v30  ;;  %v1452_v28 = vld [vmem:[#allocation4 + $0x6b0] sm:$0xff] }
 0x162   :  { %v711_v39 = vpop.f32.mrf.mxu3  ;;  %1435 = vmatpush.msrb.mxu0 %v1412_v13  ;;  %v1410_v30 = vld [vmem:[#allocation4 + $0x610] sm:$0xff] }
 0x163   :  { %1241 = vmatpush.msra.mxu3 %v1226_v33  ;;  %1199 = vmatpush.msra.mxu2 %v1192_v35  ;;  %v777_v48 = vadd.f32 %v2300_v3, %v711_v39  ;;  %v1455_v3 = vld [vmem:[#allocation4 + $0x6c8] sm:$0xff]  ;;  %v928_v33 = vadd.f32 %v2286_v45, %v908_v43 }
 0x164   :  { %v782_v56 = vpop.f32.mrf.mxu0  ;;  %1468 = vmatpush.msrb.mxu1 %v1455_v3  ;;  %1436 = vmatpush.msrb.mxu0 %v1411_v24  ;;  %v1181_v35 = vld [vmem:[#allocation4 + $0x308] sm:$0xff]  ;;  %v1336_v24 = vld [vmem:[#allocation4 + $0x520] sm:$0xff] }
 0x165   :  { %1242 = vmatpush.msra.mxu3 %v1225_v37  ;;  %1200 = vmatpush.msra.mxu2 %v1191_v40  ;;  %v875_v49 = vpop.f32.mrf.mxu1  ;;  %v1382_v37 = vld [vmem:[#allocation4 + $0x5e0] sm:$0xff]  ;;  %v944_v42 = vmax.f32 %v928_v33, 0.0  ;;  %v1334_v33 = vld [vmem:[#allocation4 + $0x510] sm:$0xff] }
 0x166   :  { %v909_v58 = vadd.f32 %v875_v49, %v777_v48  ;;  %1469 = vmatpush.msrb.mxu1 %v1454_v9  ;;  %1437 = vmatpush.msrb.mxu0 %v1410_v30  ;;  %v1180_v40 = vld [vmem:[#allocation4 + $0x300] sm:$0xff]  ;;  %v1380_v49 = vld [vmem:[#allocation4 + $0x5d0] sm:$0xff] }
 0x167   :  { %1243 = vmatpush.msra.mxu3 %v1224_v47  ;;  %1201 = vmatpush.msra.mxu2 %v1190_v44  ;;  %v1381_v47 = vld [vmem:[#allocation4 + $0x5d8] sm:$0xff] }
 0x168   :  { %v929_v6 = vadd.f32 %v2286_v45, %v909_v58  ;;  %1470 = vmatpush.msrb.mxu1 %v1453_v15  ;;  %1438 = vmatpush.msrb.mxu0 %v1409_v36  ;;  %v1344_v58 = vld [vmem:[#allocation4 + $0x560] sm:$0xff]  ;;  %v1338_v15 = vld [vmem:[#allocation4 + $0x530] sm:$0xff] }
 0x169   :  { %1244 = vmatpush.msra.mxu3 %v1223_v50  ;;  %1202 = vmatpush.msra.mxu2 %v1189_v52  ;;  %v1449_v50 = vld [vmem:[#allocation4 + $0x698] sm:$0xff] }
 0x16a   :  { %v714_v61 = vpop.f32.mrf.mxu3  ;;  %v945_v18 = vmax.f32 %v929_v6, 0.0  ;;  %1471 = vmatpush.msrb.mxu1 %v1452_v28  ;;  %1439 = vmatpush.msrb.mxu0 %v1408_v41  ;;  %v1537_v28 = vld [vmem:[#allocation4 + $0x7f8] sm:$0xff]  ;;  %v1332_v41 = vld [vmem:[#allocation4 + $0x500] sm:$0xff] }
 0x16b   :  { %1245 = vmatpush.msra.mxu3 %v1222_v0  ;;  %1203 = vmatpush.msra.mxu2 %v1188_v55  ;;  %v780_v1 = vadd.f32 %v779_v31, %v714_v61  ;;  %v1379_v0 = vld [vmem:[#allocation4 + $0x5c8] sm:$0xff]  ;;  %v1343_v61 = vld [vmem:[#allocation4 + $0x558] sm:$0xff] }
 0x16c   :  { %v2314_v23 = vpop.f32.mrf.mxu0  ;;  %1472 = vmatpush.msrb.mxu1 %v1451_v32  ;;  %v1345_v55 = vld [vmem:[#allocation4 + $0x568] sm:$0xff]  ;;  %v1536_v32 = vld [vmem:[#allocation4 + $0x7f0] sm:$0xff] }
 0x16d   :  { %1246 = vmatpush.msra.mxu3 %v1221_v59  ;;  %1204 = vmatpush.msra.mxu2 %v1187_v62  ;;  %v878_v7 = vpop.f32.mrf.mxu1  ;;  %v1377_v59 = vld [vmem:[#allocation4 + $0x5b8] sm:$0xff] }
 0x16e   :  { %v910_v11 = vadd.f32 %v878_v7, %v780_v1  ;;  %1473 = vmatpush.msrb.mxu1 %v1450_v38  ;;  %v1342_v1 = vld [vmem:[#allocation4 + $0x550] sm:$0xff]  ;;  %v1374_v7 = vld [vmem:[#allocation4 + $0x5a0] sm:$0xff]  ;;  %v1333_v38 = vld [vmem:[#allocation4 + $0x508] sm:$0xff] }
 0x16f   :  { %1247 = vmatpush.msra.mxu3 %v1220_v2  ;;  %1205 = vmatpush.msra.mxu2 %v1186_v4  ;;  %v1375_v4 = vld [vmem:[#allocation4 + $0x5a8] sm:$0xff] }
 0x170   :  { %v930_v16 = vadd.f32 %v2286_v45, %v910_v11  ;;  %1474 = vmatpush.msrb.mxu1 %v1449_v50  ;;  %v1339_v11 = vld [vmem:[#allocation4 + $0x538] sm:$0xff]  ;;  %v1532_v50 = vld [vmem:[#allocation4 + $0x7d0] sm:$0xff] }
 0x171   :  { %1248 = vmatpush.msra.mxu3 %v1219_v8  ;;  %1206 = vmatpush.msra.mxu2 %v1185_v12  ;;  %v1340_v8 = vld [vmem:[#allocation4 + $0x540] sm:$0xff] }
 0x172   :  { %v946_v20 = vmax.f32 %v930_v16, 0.0  ;;  %v717_v21 = vpop.f32.mrf.mxu3  ;;  %1475 = vmatpush.msrb.mxu1 %v1448_v54  ;;  %v1530_v54 = vld [vmem:[#allocation4 + $0x7c0] sm:$0xff] }
 0x173   :  { %1249 = vmatpush.msra.mxu3 %v1218_v14  ;;  %1207 = vmatpush.msra.mxu2 %v1184_v17  ;;  %v783_v25 = vadd.f32 %v782_v56, %v717_v21  ;;  %v1378_v56 = vld [vmem:[#allocation4 + $0x5c0] sm:$0xff]  ;;  %v1372_v14 = vld [vmem:[#allocation4 + $0x590] sm:$0xff] }
 0x174   :  { %1250 = vmatmul.f32.vlgmr.msra.gmra.mxu3 %v945_v18  ;;  %1288 = vmatmul.f32.vlgmr.msra.gmra.mxu0 %v946_v20  ;;  %v788_v52 = vpop.f32.mrf.mxu0  ;;  %v1371_v18 = vld [vmem:[#allocation4 + $0x588] sm:$0xff]  ;;  %v1370_v21 = vld [vmem:[#allocation4 + $0x580] sm:$0xff] }
 0x175   :  { %1386 = vmatpush.msrb.mxu3 %v1385_v19  ;;  %1208 = vmatpush.msra.mxu2 %v1183_v22  ;;  %v881_v31 = vpop.f32.mrf.mxu1  ;;  %v1337_v20 = vld [vmem:[#allocation4 + $0x528] sm:$0xff] }
 0x176   :  { %v911_v34 = vadd.f32 %v881_v31, %v783_v25  ;;  %1476 = vmatpush.msrb.mxu1 %v1447_v57  ;;  %v1335_v31 = vld [vmem:[#allocation4 + $0x518] sm:$0xff] }
 0x177   :  { %1387 = vmatpush.msrb.mxu3 %v1384_v26  ;;  %1209 = vmatpush.msra.mxu2 %v1182_v29  ;;  %v1495_v57 = vld [vmem:[#allocation4 + $0x758] sm:$0xff] }
 0x178   :  { %v931_v39 = vadd.f32 %v2286_v45, %v911_v34  ;;  %1477 = vmatpush.msrb.mxu1 %v1446_v60 }
 0x179   :  { %1388 = vmatpush.msrb.mxu3 %v1383_v27  ;;  %1210 = vmatpush.msra.mxu2 %v1181_v35  ;;  %v1535_v35 = vld [vmem:[#allocation4 + $0x7e8] sm:$0xff] }
 0x17a   :  { %v947_v44 = vmax.f32 %v931_v39, 0.0  ;;  %v720_v48 = vpop.f32.mrf.mxu3  ;;  %v1534_v39 = vld [vmem:[#allocation4 + $0x7e0] sm:$0xff] }
 0x17b   :  { %1389 = vmatpush.msrb.mxu3 %v1382_v37  ;;  %1211 = vmatpush.msra.mxu2 %v1180_v40  ;;  %v786_v19 = vadd.f32 %v2314_v23, %v720_v48  ;;  %v1499_v48 = vld [vmem:[#allocation4 + $0x778] sm:$0xff] }
 0x17c   :  { %1212 = vmatmul.f32.vlgmr.msra.gmra.mxu2 %v944_v42  ;;  %1326 = vmatmul.f32.vlgmr.msra.gmra.mxu1 %v947_v44  ;;  %v791_v6 = vpop.f32.mrf.mxu0 }
 0x17d   :  { %1390 = vmatpush.msrb.mxu3 %v1381_v47  ;;  %1348 = vmatpush.msrb.mxu2 %v1347_v46  ;;  %v2318_v53 = vpop.f32.mrf.mxu1  ;;  %v1533_v47 = vld [vmem:[#allocation4 + $0x7d8] sm:$0xff] }
 0x17e   :  { %v912_v29 = vadd.f32 %v2318_v53, %v786_v19  ;;  %v1531_v53 = vld [vmem:[#allocation4 + $0x7c8] sm:$0xff]  ;;  %v1486_v19 = vld [vmem:[#allocation4 + $0x710] sm:$0xff] }
 0x17f   :  { %1391 = vmatpush.msrb.mxu3 %v1380_v49  ;;  %1349 = vmatpush.msrb.mxu2 %v1346_v51  ;;  %v1498_v51 = vld [vmem:[#allocation4 + $0x770] sm:$0xff] }
 0x180   :  { %v932_v36 = vadd.f32 %v2286_v45, %v912_v29 }
 0x181   :  { %1392 = vmatpush.msrb.mxu3 %v1379_v0  ;;  %1350 = vmatpush.msrb.mxu2 %v1345_v55  ;;  %v1497_v0 = vld [vmem:[#allocation4 + $0x768] sm:$0xff]  ;;  %v1496_v55 = vld [vmem:[#allocation4 + $0x760] sm:$0xff] }
 0x182   :  { %v723_v62 = vpop.f32.mrf.mxu3  ;;  %v948_v42 = vmax.f32 %v932_v36, 0.0  ;;  %v1571_v36 = vld [vmem:[#allocation6 + $0x30] sm:$0xff] }
 0x183   :  { %1393 = vmatpush.msrb.mxu3 %v1378_v56  ;;  %1351 = vmatpush.msrb.mxu2 %v1344_v58  ;;  %v789_v2 = vadd.f32 %v788_v52, %v723_v62  ;;  %v1529_v56 = vld [vmem:[#allocation4 + $0x7b8] sm:$0xff] }
 0x184   :  { %v794_v25 = vpop.f32.mrf.mxu0 }
 0x185   :  { %1394 = vmatpush.msrb.mxu3 %v1377_v59  ;;  %1352 = vmatpush.msrb.mxu2 %v1343_v61  ;;  %v887_v3 = vpop.f32.mrf.mxu1  ;;  %v1528_v59 = vld [vmem:[#allocation4 + $0x7b0] sm:$0xff] }
 0x186   :  { %v913_v9 = vadd.f32 %v887_v3, %v789_v2  ;;  %v1494_v61 = vld [vmem:[#allocation4 + $0x750] sm:$0xff]  ;;  %v1493_v2 = vld [vmem:[#allocation4 + $0x748] sm:$0xff]  ;;  %v1526_v3 = vld [vmem:[#allocation4 + $0x7a0] sm:$0xff] }
 0x187   :  { %1395 = vmatpush.msrb.mxu3 %v1376_v63  ;;  %1353 = vmatpush.msrb.mxu2 %v1342_v1  ;;  %v1527_v63 = vld [vmem:[#allocation4 + $0x7a8] sm:$0xff] }
 0x188   :  { %v933_v16 = vadd.f32 %v2286_v45, %v913_v9  ;;  %v1490_v9 = vld [vmem:[#allocation4 + $0x730] sm:$0xff] }
 0x189   :  { %1396 = vmatpush.msrb.mxu3 %v1375_v4  ;;  %1354 = vmatpush.msrb.mxu2 %v1341_v5  ;;  %v1492_v4 = vld [vmem:[#allocation4 + $0x740] sm:$0xff] }
 0x18a   :  { %v726_v12 = vpop.f32.mrf.mxu3  ;;  %v949_v26 = vmax.f32 %v933_v16, 0.0 }
 0x18b   :  { %1397 = vmatpush.msrb.mxu3 %v1374_v7  ;;  %1355 = vmatpush.msrb.mxu2 %v1340_v8  ;;  %v792_v13 = vadd.f32 %v791_v6, %v726_v12  ;;  %v1525_v6 = vld [vmem:[#allocation4 + $0x798] sm:$0xff]  ;;  %v1524_v8 = vld [vmem:[#allocation4 + $0x790] sm:$0xff] }
 0x18c   :  { %v797_v46 = vpop.f32.mrf.mxu0  ;;  %v1491_v7 = vld [vmem:[#allocation4 + $0x738] sm:$0xff] }
 0x18d   :  { %1398 = vmatpush.msrb.mxu3 %v1373_v10  ;;  %1356 = vmatpush.msrb.mxu2 %v1339_v11  ;;  %v890_v17 = vpop.f32.mrf.mxu1  ;;  %v1523_v11 = vld [vmem:[#allocation4 + $0x788] sm:$0xff] }
 0x18e   :  { %v914_v43 = vadd.f32 %v890_v17, %v792_v13  ;;  %v1489_v13 = vld [vmem:[#allocation4 + $0x728] sm:$0xff] }
 0x18f   :  { %1399 = vmatpush.msrb.mxu3 %v1372_v14  ;;  %1357 = vmatpush.msrb.mxu2 %v1338_v15  ;;  %v1522_v14 = vld [vmem:[#allocation4 + $0x780] sm:$0xff] }
 0x190   :  { %v934_v22 = vadd.f32 %v2286_v45, %v914_v43  ;;  %v1488_v15 = vld [vmem:[#allocation4 + $0x720] sm:$0xff] }
 0x191   :  { %1400 = vmatpush.msrb.mxu3 %v1371_v18  ;;  %1358 = vmatpush.msrb.mxu2 %v1337_v20  ;;  %v1487_v18 = vld [vmem:[#allocation4 + $0x718] sm:$0xff]  ;;  %v1485_v20 = vld [vmem:[#allocation4 + $0x708] sm:$0xff] }
 0x192   :  { %v950_v30 = vmax.f32 %v934_v22, 0.0  ;;  %v729_v27 = vpop.f32.mrf.mxu3 }
 0x193   :  { %1401 = vmatpush.msrb.mxu3 %v1370_v21  ;;  %1359 = vmatpush.msrb.mxu2 %v1336_v24  ;;  %v795_v23 = vadd.f32 %v794_v25, %v729_v27  ;;  %v1484_v21 = vld [vmem:[#allocation4 + $0x700] sm:$0xff]  ;;  %v1580_v24 = vld [vmem:[#allocation6 + $0x78] sm:$0xff]  ;;  %v1579_v25 = vld [vmem:[#allocation6 + $0x70] sm:$0xff] }
 0x194   :  { %1402 = vmatmul.f32.vlgmr.msrb.gmra.mxu3 %v949_v26  ;;  %1440 = vmatmul.f32.vlgmr.msrb.gmra.mxu0 %v950_v30  ;;  %v800_v60 = vpop.f32.mrf.mxu0  ;;  %v1578_v26 = vld [vmem:[#allocation6 + $0x68] sm:$0xff]  ;;  %v1576_v30 = vld [vmem:[#allocation6 + $0x58] sm:$0xff] }
 0x195   :  { %1538 = vmatpush.msra.mxu3 %v1537_v28  ;;  %1360 = vmatpush.msrb.mxu2 %v1335_v31  ;;  %v893_v34 = vpop.f32.mrf.mxu1  ;;  %v1577_v28 = vld [vmem:[#allocation6 + $0x60] sm:$0xff]  ;;  %v1575_v31 = vld [vmem:[#allocation6 + $0x50] sm:$0xff] }
 0x196   :  { %v915_v37 = vadd.f32 %v893_v34, %v795_v23  ;;  %1585 = vmatpush.msra.mxu0 %v1580_v24  ;;  %v1607_v24 = vld [vmem:[#allocation8 + $0x8] sm:$0xff] }
 0x197   :  { %1539 = vmatpush.msra.mxu3 %v1536_v32  ;;  %1361 = vmatpush.msrb.mxu2 %v1334_v33  ;;  %v1573_v32 = vld [vmem:[#allocation6 + $0x40] sm:$0xff]  ;;  %v1572_v33 = vld [vmem:[#allocation6 + $0x38] sm:$0xff] }
 0x198   :  { %v935_v40 = vadd.f32 %v2286_v45, %v915_v37  ;;  %1586 = vmatpush.msra.mxu0 %v1579_v25  ;;  %v1606_v25 = vld [vmem:[#allocation8] sm:$0xff] }
 0x199   :  { %1540 = vmatpush.msra.mxu3 %v1535_v35  ;;  %1362 = vmatpush.msrb.mxu2 %v1333_v38 }
 0x19a   :  { %v951_v44 = vmax.f32 %v935_v40, 0.0  ;;  %v732_v49 = vpop.f32.mrf.mxu3  ;;  %1587 = vmatpush.msra.mxu0 %v1578_v26  ;;  %v1773_v26 = vld [vmem:[%s2348_s8] ss:$0 sm:$0xff] }
 0x19b   :  { %1541 = vmatpush.msra.mxu3 %v1534_v39  ;;  %1363 = vmatpush.msrb.mxu2 %v1332_v41  ;;  %v798_v12 = vadd.f32 %v797_v46, %v732_v49  ;;  %v1570_v39 = vld [vmem:[#allocation6 + $0x28] sm:$0xff]  ;;  %v1567_v49 = vld [vmem:[#allocation6 + $0x10] sm:$0xff] }
 0x19c   :  { %1364 = vmatmul.f32.vlgmr.msrb.gmra.mxu2 %v948_v42  ;;  %1478 = vmatmul.f32.vlgmr.msrb.gmra.mxu1 %v951_v44  ;;  %v1568_v44 = vld [vmem:[#allocation6 + $0x18] sm:$0xff] }
 0x19d   :  { %1542 = vmatpush.msra.mxu3 %v1533_v47  ;;  %1500 = vmatpush.msra.mxu2 %v1499_v48  ;;  %v896_v52 = vpop.f32.mrf.mxu1  ;;  %v1569_v47 = vld [vmem:[#allocation6 + $0x20] sm:$0xff] }
 0x19e   :  { %v916_v17 = vadd.f32 %v896_v52, %v798_v12  ;;  %1588 = vmatpush.msra.mxu0 %v1577_v28  ;;  %v1565_v52 = vld [vmem:[#allocation6] sm:$0xff] }
 0x19f   :  { %1543 = vmatpush.msra.mxu3 %v1532_v50  ;;  %1501 = vmatpush.msra.mxu2 %v1498_v51  ;;  %v1566_v51 = vld [vmem:[#allocation6 + $0x8] sm:$0xff]  ;;  %v1610_v12 = vld [vmem:[#allocation8 + $0x20] sm:$0xff] }
 0x1a0   :  { %v936_v43 = vadd.f32 %v2286_v45, %v916_v17  ;;  %1589 = vmatpush.msra.mxu0 %v1576_v30 }
 0x1a1   :  { %1544 = vmatpush.msra.mxu3 %v1531_v53  ;;  %1502 = vmatpush.msra.mxu2 %v1497_v0 }
 0x1a2   :  { %v735_v58 = vpop.f32.mrf.mxu3  ;;  %v952_v22 = vmax.f32 %v936_v43, 0.0  ;;  %1590 = vmatpush.msra.mxu0 %v1575_v31  ;;  %v1774_v31 = vld [vmem:[%s2350_s10] ss:$0 sm:$0xff] }
 0x1a3   :  { %1545 = vmatpush.msra.mxu3 %v1530_v54  ;;  %1503 = vmatpush.msra.mxu2 %v1496_v55  ;;  %v801_v62 = vadd.f32 %v800_v60, %v735_v58  ;;  %v1621_v54 = vld [vmem:[#allocation8 + $0x78] sm:$0xff]  ;;  %v1620_v55 = vld [vmem:[#allocation8 + $0x70] sm:$0xff] }
 0x1a4   :  { %1626 = vmatpush.msra.mxu1 %v1621_v54  ;;  %v1617_v60 = vld [vmem:[#allocation8 + $0x58] sm:$0xff] }
 0x1a5   :  { %1546 = vmatpush.msra.mxu3 %v1529_v56  ;;  %1504 = vmatpush.msra.mxu2 %v1495_v57  ;;  %v899_v1 = vpop.f32.mrf.mxu1  ;;  %v1619_v56 = vld [vmem:[#allocation8 + $0x68] sm:$0xff] }
 0x1a6   :  { %v917_v5 = vadd.f32 %v899_v1, %v801_v62  ;;  %1627 = vmatpush.msra.mxu1 %v1620_v55  ;;  %v1616_v1 = vld [vmem:[#allocation8 + $0x50] sm:$0xff] }
 0x1a7   :  { %1547 = vmatpush.msra.mxu3 %v1528_v59  ;;  %1505 = vmatpush.msra.mxu2 %v1494_v61  ;;  %v1618_v59 = vld [vmem:[#allocation8 + $0x60] sm:$0xff] }
 0x1a8   :  { %v937_v10 = vadd.f32 %v2286_v45, %v917_v5  ;;  %v1574_v45 = vld [vmem:[#allocation6 + $0x48] sm:$0xff]  ;;  %1628 = vmatpush.msra.mxu1 %v1619_v56 }
 0x1a9   :  { %1548 = vmatpush.msra.mxu3 %v1527_v63  ;;  %1506 = vmatpush.msra.mxu2 %v1493_v2 }
 0x1aa   :  { %v953_v16 = vmax.f32 %v937_v10, 0.0  ;;  %1591 = vmatpush.msra.mxu0 %v1574_v45  ;;  %1629 = vmatpush.msra.mxu1 %v1618_v59 }
 0x1ab   :  { %1549 = vmatpush.msra.mxu3 %v1526_v3  ;;  %1507 = vmatpush.msra.mxu2 %v1492_v4  ;;  %v1615_v3 = vld [vmem:[#allocation8 + $0x48] sm:$0xff]  ;;  %v1614_v4 = vld [vmem:[#allocation8 + $0x40] sm:$0xff] }
 0x1ac   :  { %1592 = vmatpush.msra.mxu0 %v1573_v32  ;;  %1630 = vmatpush.msra.mxu1 %v1617_v60 }
 0x1ad   :  { %1550 = vmatpush.msra.mxu3 %v1525_v6  ;;  %1508 = vmatpush.msra.mxu2 %v1491_v7  ;;  %v1613_v7 = vld [vmem:[#allocation8 + $0x38] sm:$0xff] }
 0x1ae   :  { %1593 = vmatpush.msra.mxu0 %v1572_v33  ;;  %1631 = vmatpush.msra.mxu1 %v1616_v1 }
 0x1af   :  { %1551 = vmatpush.msra.mxu3 %v1524_v8  ;;  %1509 = vmatpush.msra.mxu2 %v1490_v9  ;;  %v1612_v8 = vld [vmem:[#allocation8 + $0x30] sm:$0xff] }
 0x1b0   :  { %1594 = vmatpush.msra.mxu0 %v1571_v36  ;;  %1632 = vmatpush.msra.mxu1 %v1615_v3 }
 0x1b1   :  { %1552 = vmatpush.msra.mxu3 %v1523_v11  ;;  %1510 = vmatpush.msra.mxu2 %v1489_v13  ;;  %v1611_v11 = vld [vmem:[#allocation8 + $0x28] sm:$0xff] }
 0x1b2   :  { %1595 = vmatpush.msra.mxu0 %v1570_v39  ;;  %1633 = vmatpush.msra.mxu1 %v1614_v4 }
 0x1b3   :  { %1553 = vmatpush.msra.mxu3 %v1522_v14  ;;  %1511 = vmatpush.msra.mxu2 %v1488_v15  ;;  %v1609_v15 = vld [vmem:[#allocation8 + $0x18] sm:$0xff] }
 0x1b4   :  { %1554 = vmatmul.f32.vlgmr.msra.gmra.mxu3 %v953_v16  ;;  %1596 = vmatpush.msra.mxu0 %v1569_v47 }
 0x1b5   :  { %1512 = vmatpush.msra.mxu2 %v1487_v18  ;;  %1634 = vmatpush.msra.mxu1 %v1613_v7  ;;  %v1772_v18 = vld [vmem:[%s2346_s6] ss:$0 sm:$0xff] }
 0x1b6   :  { %1597 = vmatpush.msra.mxu0 %v1568_v44 }
 0x1b7   :  { %1513 = vmatpush.msra.mxu2 %v1486_v19  ;;  %v1024_v27 = vpop.f32.mrf.mxu3  ;;  %1635 = vmatpush.msra.mxu1 %v1612_v8 }
 0x1b8   :  { %1598 = vmatpush.msra.mxu0 %v1567_v49 }
 0x1b9   :  { %1514 = vmatpush.msra.mxu2 %v1485_v20  ;;  %1636 = vmatpush.msra.mxu1 %v1611_v11 }
 0x1ba   :  { %1599 = vmatpush.msra.mxu0 %v1566_v51 }
 0x1bb   :  { %1515 = vmatpush.msra.mxu2 %v1484_v21  ;;  %1637 = vmatpush.msra.mxu1 %v1610_v12 }
 0x1bc   :  { %1516 = vmatmul.f32.vlgmr.msra.gmra.mxu2 %v952_v22  ;;  %1600 = vmatpush.msra.mxu0 %v1565_v52  ;;  %v1608_v22 = vld [vmem:[#allocation8 + $0x10] sm:$0xff] }
 0x1bd   :  { %1638 = vmatpush.msra.mxu1 %v1609_v15 }
 0x1bf   :  { %v1004_v29 = vpop.f32.mrf.mxu2  ;;  %1639 = vmatpush.msra.mxu1 %v1608_v22 }
 0x1c0   :  { %v1025_v35 = vadd.f32 %v1024_v27, %v1004_v29 }
 0x1c1   :  { %1640 = vmatpush.msra.mxu1 %v1607_v24 }
 0x1c3   :  { %1641 = vmatpush.msra.mxu1 %v1606_v25 }
 0x1c7   :  { %v1061_v23 = vpop.f32.mrf.mxu2 }
 0x1c8   :  { %v1064_v38 = vadd.f32 %v1061_v23, %v1025_v35 }
 0x1cf   :  { %v1099_v34 = vpop.f32.mrf.mxu3 }
 0x1d0   :  { %v1102_v40 = vadd.f32 %v1099_v34, %v1064_v38 }
 0x1df   :  { %v1137_v37 = vpop.f32.mrf.mxu2  ;;  %v1175_v42 = vpop.f32.mrf.mxu3 }
 0x1e0   :  { %v1140_v41 = vadd.f32 %v1137_v37, %v1102_v40 }
 0x1e2   :  { %v1178_v48 = vadd.f32 %v1175_v42, %v1140_v41 }
 0x1f1   :  { %v1289_v57 = vpop.f32.mrf.mxu0 }
 0x1f7   :  { %v1251_v53 = vpop.f32.mrf.mxu3 }
 0x1f9   :  { %v1327_v61 = vpop.f32.mrf.mxu1 }
 0x1ff   :  { %v1213_v46 = vpop.f32.mrf.mxu2 }
 0x200   :  { %v1216_v50 = vadd.f32 %v1213_v46, %v1178_v48 }
 0x202   :  { %v1254_v0 = vadd.f32 %v1251_v53, %v1216_v50 }
 0x204   :  { %v1292_v58 = vadd.f32 %v1289_v57, %v1254_v0 }
 0x206   :  { %v1330_v63 = vadd.f32 %v1327_v61, %v1292_v58 }
 0x211   :  { %v1441_v9 = vpop.f32.mrf.mxu0 }
 0x217   :  { %v1403_v5 = vpop.f32.mrf.mxu3 }
 0x219   :  { %v1479_v13 = vpop.f32.mrf.mxu1 }
 0x21f   :  { %v1365_v62 = vpop.f32.mrf.mxu2 }
 0x220   :  { %v1368_v2 = vadd.f32 %v1365_v62, %v1330_v63 }
 0x222   :  { %v1406_v6 = vadd.f32 %v1403_v5, %v1368_v2 }
 0x224   :  { %v1444_v10 = vadd.f32 %v1441_v9, %v1406_v6 }
 0x226   :  { %v1482_v14 = vadd.f32 %v1479_v13, %v1444_v10 }
 0x237   :  { %v1555_v19 = vpop.f32.mrf.mxu3 }
 0x23f   :  { %v1517_v16 = vpop.f32.mrf.mxu2 }
 0x240   :  { %v1520_v17 = vadd.f32 %v1517_v16, %v1482_v14 }
 0x242   :  { %v1558_v43 = vadd.f32 %v1555_v19, %v1520_v17 }
 0x244   :  { %v1563_v20 = vadd.f32 %v1772_v18, %v1558_v43 }
 0x246   :  { %v1564_v21 = vmax.f32 %v1563_v20, 0.0 }
 0x248   :  { %1601 = vmatmul.f32.vlgmr.msra.gmra.mxu0 %v1564_v21 }
 0x2c5   :  { %v1602_v28 = vpop.f32.mrf.mxu0 }
 0x2c6   :  { %v1603_v29 = vadd.f32 %v1773_v26, %v1602_v28 }
 0x2c8   :  { %v1605_v30 = vmax.f32 %v1603_v29, 0.0 }
 0x2ca   :  { %1642 = vmatmul.f32.vlgmr.msra.gmra.mxu1 %v1605_v30 }
 0x347   :  { %v1643_v45 = vpop.f32.mrf.mxu1 }
 0x348   :  { %v1644_v27 = vadd.f32 %v1774_v31, %v1643_v45 }
 0x34a   :  { %v1646_v23 = vmul.f32 %v1644_v27, %v1644_v27 }
 0x34c   :  { %1647 = vadd.xlane.f32.xlu0 %v1646_v23 }
 0x3bf   :  { %v1648_v32 = vpop.xlane.xlu0 %1647 }
 0x3c0   :  { %v1649_v33 = vmax.f32 %v1648_v32, 1e-24 }
 0x3c2   :  { %1775 = vrsqrt.f32 %v1649_v33  ;;  %vm1656_vm2 = vweird.f32 %v1649_v33 }
 0x3c8   :  { %v1776_v34 = vpop.eup %1775 }
 0x3c9   :  { %v1651_v35 = vmul.f32 %v1776_v34, %v1649_v33  ;;  %vm1657_vm1 = vweird.f32 %v1776_v34 }
 0x3ca   :  { %vm1658_vm3 = vmor %vm1656_vm2, %vm1657_vm1 }
 0x3cb   :  { %v1652_v36 = vmul.f32 %v1776_v34, %v1651_v35 }
 0x3cd   :  { %v1653_v37 = vmul.f32 0.5, %v1652_v36 }
 0x3cf   :  { %v1654_v38 = vsub.f32 1.5, %v1653_v37 }
 0x3d1   :  { %v1655_v39 = vmul.f32 %v1776_v34, %v1654_v38 }
 0x3d3   :  { %v1659_v40 = vsel %vm1658_vm3, %v1776_v34, %v1655_v39 }
 0x3d4   :  { %v1660_v41 = vmul.f32 %v1659_v40, %v1644_v27 }
 0x3d6   :  { %1661 = vst [vmem:[%s2351_s11] sm:$0xff] %v1660_v41 }
 0x3d7   :  { %1666 = vsyncpa [#allocation5], 1 }
 0x3d8   :  { %1667 = vsyncpa [#allocation7], 1 }

</bundles_post_ra>
